<compile_context>
chip_gen: v5e
topology: v5e:2x2
jax: 0.10.0
libtpu: 0.0.40
codegen_flags: <defaults>
</compile_context>

<pallas_src>
import functools
import math

import jax
import jax.numpy as jnp
from jax.experimental import pallas as pl
from jax.experimental.pallas import tpu as pltpu


def _attention_kernel(x_ref, gamma_ref, beta_ref, wqkv_ref, wout_ref, bout_ref,
                      o_ref, *, heads, dim_head, scale, eps):
    Bb, N, D = x_ref.shape
    inner = heads * dim_head
    M = Bb * N

    # ---- LayerNorm over last dim (f32, eps matches nn.LayerNorm default) ----
    x = x_ref[...].astype(jnp.float32)                        # (Bb, N, D)
    mean = jnp.mean(x, axis=-1, keepdims=True)
    var = jnp.mean(jnp.square(x - mean), axis=-1, keepdims=True)
    x_ln = (x - mean) * jax.lax.rsqrt(var + eps)
    x_ln = x_ln * gamma_ref[...] + beta_ref[...]              # (Bb, N, D)

    # ---- QKV projection: one (M, D) x (D, 3*inner) bf16 matmul, f32 accum ----
    xb = x_ln.astype(jnp.bfloat16).reshape(M, D)
    qkv = jnp.dot(xb, wqkv_ref[...], preferred_element_type=jnp.float32)

    def to_heads(t):  # (M, inner) bf16 -> (Bb*heads, N, dim_head)
        t = t.reshape(Bb, N, heads, dim_head)
        t = pltpu.einshape("bnhd->bhnd", t)                   # single relayout per tensor
        return t.reshape(Bb * heads, N, dim_head)

    # Fold the attention scale into Q while still in f32 (cheaper than scaling
    # the (BH, N, N) score matrix, and more accurate than scaling in bf16).
    q = to_heads((qkv[:, 0 * inner:1 * inner] * scale).astype(jnp.bfloat16))
    k = to_heads(qkv[:, 1 * inner:2 * inner].astype(jnp.bfloat16))
    v = to_heads(qkv[:, 2 * inner:3 * inner].astype(jnp.bfloat16))

    # ---- Scaled dot-product attention, batched over (batch*heads) ----
    dots = jnp.einsum("bqd,bkd->bqk", q, k,
                      preferred_element_type=jnp.float32)     # (BH, N, N) f32
    dots = dots - jnp.max(dots, axis=-1, keepdims=True)
    p = jnp.exp(dots)
    attn = p * pl.reciprocal(jnp.sum(p, axis=-1, keepdims=True), approx=True)
    ctx = jnp.einsum("bqk,bkd->bqd", attn.astype(jnp.bfloat16), v,
                     preferred_element_type=jnp.float32)      # (BH, N, dh) f32

    # ---- Merge heads back and apply the output projection (bf16 matmul) ----
    ctx = ctx.astype(jnp.bfloat16).reshape(Bb, heads, N, dim_head)
    ctx = pltpu.einshape("bhnd->bnhd", ctx).reshape(M, inner)
    y = jnp.dot(ctx, wout_ref[...], preferred_element_type=jnp.float32)
    y = y + bout_ref[...]                                     # bias (1, D) broadcast
    o_ref[...] = y.reshape(Bb, N, D).astype(o_ref.dtype)


def _pick_batch_block(B, N):
    # Smallest divisor of B whose Bb*N rows fill the MXU M dimension (>=256);
    # otherwise take all of B in one step (tiny inputs: minimize grid overhead).
    for bb in range(1, B + 1):
        if B % bb == 0 and bb * N >= 256:
            return bb
    return B


def attention_forward(x, params, *, heads, dim_head, batch_block=None):
    B, N, D = x.shape
    inner = heads * dim_head
    scale = dim_head ** -0.5
    gamma, beta, wqkv, wout, bout = params

    Bb = batch_block if batch_block is not None else _pick_batch_block(B, N)
    assert B % Bb == 0, "batch block must divide batch"

    # bf16 weights: MXU-native operands; halves weight VMEM (matters on v7x).
    wqkv_b = wqkv.astype(jnp.bfloat16)
    wout_b = wout.astype(jnp.bfloat16)

    kernel = functools.partial(_attention_kernel, heads=heads, dim_head=dim_head,
                               scale=scale, eps=1e-5)

    return pl.pallas_call(
        kernel,
        out_shape=jax.ShapeDtypeStruct((B, N, D), x.dtype),
        grid_spec=pltpu.PrefetchScalarGridSpec(
            num_scalar_prefetch=0,
            grid=(B // Bb,),
            in_specs=[
                pl.BlockSpec((Bb, N, D), lambda b: (b, 0, 0)),       # x
                pl.BlockSpec((1, D), lambda b: (0, 0)),              # ln gamma
                pl.BlockSpec((1, D), lambda b: (0, 0)),              # ln beta
                pl.BlockSpec((D, 3 * inner), lambda b: (0, 0)),      # W_qkv (bf16)
                pl.BlockSpec((inner, D), lambda b: (0, 0)),          # W_out (bf16)
                pl.BlockSpec((1, D), lambda b: (0, 0)),              # b_out
            ],
            out_specs=pl.BlockSpec((Bb, N, D), lambda b: (b, 0, 0)),
        ),
        compiler_params=pltpu.CompilerParams(
            dimension_semantics=("parallel",),
            vmem_limit_bytes=32 * 1024 * 1024,
        ),
    )(x, gamma, beta, wqkv_b, wout_b, bout)


def init_params(key, dim, heads, dim_head):
    inner = heads * dim_head
    k1, k2, k3 = jax.random.split(key, 3)
    gamma = jnp.ones((1, dim), jnp.float32)
    beta = jnp.zeros((1, dim), jnp.float32)
    # match nn.Linear default init scale (uniform +- 1/sqrt(fan_in))
    wqkv = jax.random.uniform(k1, (dim, 3 * inner), jnp.float32,
                              -1.0 / math.sqrt(dim), 1.0 / math.sqrt(dim))
    wout = jax.random.uniform(k2, (inner, dim), jnp.float32,
                              -1.0 / math.sqrt(inner), 1.0 / math.sqrt(inner))
    bout = jax.random.uniform(k3, (1, dim), jnp.float32,
                              -1.0 / math.sqrt(inner), 1.0 / math.sqrt(inner))
    return gamma, beta, wqkv, wout, bout


def reference_forward(x, params, *, heads, dim_head):
    # Plain-JAX f32 reference mirroring the PyTorch forward (dropout=0).
    gamma, beta, wqkv, wout, bout = params
    scale = dim_head ** -0.5
    mean = jnp.mean(x, axis=-1, keepdims=True)
    var = jnp.mean((x - mean) ** 2, axis=-1, keepdims=True)
    x_ln = (x - mean) / jnp.sqrt(var + 1e-5) * gamma[0] + beta[0]
    qkv = x_ln @ wqkv
    q, k, v = jnp.split(qkv, 3, axis=-1)
    B, N, _ = x.shape

    def to_heads(t):
        return t.reshape(B, N, heads, dim_head).transpose(0, 2, 1, 3)

    q, k, v = map(to_heads, (q, k, v))
    dots = jnp.einsum("bhnd,bhmd->bhnm", q, k) * scale
    attn = jax.nn.softmax(dots, axis=-1)
    out = jnp.einsum("bhnm,bhmd->bhnd", attn, v)
    out = out.transpose(0, 2, 1, 3).reshape(B, N, heads * dim_head)
    return out @ wout + bout[0]


if __name__ == "__main__":
    B, N, D = 2, 8, 32
    heads, dim_head = 4, 16  # inner_dim = 64, project_out = True

    key = jax.random.PRNGKey(0)
    kx, kp = jax.random.split(key)
    x = jax.random.normal(kx, (B, N, D), jnp.float32)
    params = init_params(kp, D, heads, dim_head)

    out = attention_forward(x, params, heads=heads, dim_head=dim_head)
    out = jax.block_until_ready(out)

    ref = reference_forward(x, params, heads=heads, dim_head=dim_head)
    assert out.shape == (B, N, D)
    # bf16 matmul operands -> loosened tolerance vs. the f32 reference.
    assert jnp.allclose(out, ref, atol=5e-2, rtol=5e-2), "mismatch vs reference"
    print("KERNEL_OK")
</pallas_src>

<mosaic_0001>
module attributes {stable_mosaic.version = 11 : i64} {
  func.func @_attention_kernel(%arg0: i32, %arg1: memref<2x8x32xf32, #tpu.memory_space<vmem>>, %arg2: memref<1x32xf32, #tpu.memory_space<vmem>>, %arg3: memref<1x32xf32, #tpu.memory_space<vmem>>, %arg4: memref<32x192xbf16, #tpu.memory_space<vmem>>, %arg5: memref<64x32xbf16, #tpu.memory_space<vmem>>, %arg6: memref<1x32xf32, #tpu.memory_space<vmem>>, %arg7: memref<2x8x32xf32, #tpu.memory_space<vmem>>) attributes {dimension_semantics = [#tpu.dimension_semantics<parallel>], iteration_bounds = array<i64: 1>, scalar_prefetch = 0 : i64, scratch_operands = 0 : i64, tpu.core_type = #tpu.core_type<tc>, window_params = [{transform_indices = @transform_0, window_bounds = array<i64: 2, 8, 32>}, {pipeline_mode = #tpu.pipeline_mode<synchronous>, transform_indices = @transform_1, window_bounds = array<i64: 1, 32>}, {pipeline_mode = #tpu.pipeline_mode<synchronous>, transform_indices = @transform_2, window_bounds = array<i64: 1, 32>}, {pipeline_mode = #tpu.pipeline_mode<synchronous>, transform_indices = @transform_3, window_bounds = array<i64: 32, 192>}, {pipeline_mode = #tpu.pipeline_mode<synchronous>, transform_indices = @transform_4, window_bounds = array<i64: 64, 32>}, {pipeline_mode = #tpu.pipeline_mode<synchronous>, transform_indices = @transform_5, window_bounds = array<i64: 1, 32>}, {transform_indices = @transform_6, window_bounds = array<i64: 2, 8, 32>}]} {
    %c0 = arith.constant 0 : index
    %c0_0 = arith.constant 0 : index
    %c0_1 = arith.constant 0 : index
    %0 = vector.load %arg1[%c0, %c0_0, %c0_1] : memref<2x8x32xf32, #tpu.memory_space<vmem>>, vector<2x8x32xf32>
    %cst = arith.constant dense<0.000000e+00> : vector<2x8xf32>
    %1 = vector.multi_reduction <add>, %0, %cst [2] : vector<2x8x32xf32> to vector<2x8xf32>
    %2 = vector.shape_cast %1 : vector<2x8xf32> to vector<2x8x1xf32>
    %cst_2 = arith.constant 3.200000e+01 : f32
    %3 = vector.broadcast %cst_2 : f32 to vector<2x8x1xf32>
    %4 = arith.divf %2, %3 : vector<2x8x1xf32>
    %5 = vector.broadcast %4 : vector<2x8x1xf32> to vector<2x8x32xf32>
    %6 = arith.subf %0, %5 : vector<2x8x32xf32>
    %7 = arith.mulf %6, %6 : vector<2x8x32xf32>
    %cst_3 = arith.constant dense<0.000000e+00> : vector<2x8xf32>
    %8 = vector.multi_reduction <add>, %7, %cst_3 [2] : vector<2x8x32xf32> to vector<2x8xf32>
    %9 = vector.shape_cast %8 : vector<2x8xf32> to vector<2x8x1xf32>
    %cst_4 = arith.constant 3.200000e+01 : f32
    %10 = vector.broadcast %cst_4 : f32 to vector<2x8x1xf32>
    %11 = arith.divf %9, %10 : vector<2x8x1xf32>
    %12 = vector.broadcast %4 : vector<2x8x1xf32> to vector<2x8x32xf32>
    %13 = arith.subf %0, %12 : vector<2x8x32xf32>
    %cst_5 = arith.constant 9.99999974E-6 : f32
    %14 = vector.broadcast %cst_5 : f32 to vector<2x8x1xf32>
    %15 = arith.addf %11, %14 : vector<2x8x1xf32>
    %16 = math.rsqrt %15 : vector<2x8x1xf32>
    %17 = vector.broadcast %16 : vector<2x8x1xf32> to vector<2x8x32xf32>
    %18 = arith.mulf %13, %17 : vector<2x8x32xf32>
    %c0_6 = arith.constant 0 : index
    %c0_7 = arith.constant 0 : index
    %19 = vector.load %arg2[%c0_6, %c0_7] : memref<1x32xf32, #tpu.memory_space<vmem>>, vector<1x32xf32>
    %20 = vector.shape_cast %19 : vector<1x32xf32> to vector<1x1x32xf32>
    %21 = vector.broadcast %20 : vector<1x1x32xf32> to vector<2x8x32xf32>
    %22 = arith.mulf %18, %21 : vector<2x8x32xf32>
    %c0_8 = arith.constant 0 : index
    %c0_9 = arith.constant 0 : index
    %23 = vector.load %arg3[%c0_8, %c0_9] : memref<1x32xf32, #tpu.memory_space<vmem>>, vector<1x32xf32>
    %24 = vector.shape_cast %23 : vector<1x32xf32> to vector<1x1x32xf32>
    %25 = vector.broadcast %24 : vector<1x1x32xf32> to vector<2x8x32xf32>
    %26 = arith.addf %22, %25 : vector<2x8x32xf32>
    %27 = arith.truncf %26 : vector<2x8x32xf32> to vector<2x8x32xbf16>
    %28 = vector.shape_cast %27 : vector<2x8x32xbf16> to vector<16x32xbf16>
    %c0_10 = arith.constant 0 : index
    %c0_11 = arith.constant 0 : index
    %29 = vector.load %arg4[%c0_10, %c0_11] : memref<32x192xbf16, #tpu.memory_space<vmem>>, vector<32x192xbf16>
    %cst_12 = arith.constant dense<0.000000e+00> : vector<16x192xf32>
    %30 = tpu.matmul %28, %29, %cst_12 {dimension_numbers = #tpu.dot_dimension_numbers<[1], [0], [0], [1], [0, 0, 1, 1], [], []>} : vector<16x32xbf16>, vector<32x192xbf16>, vector<16x192xf32> -> vector<16x192xf32>
    %31 = vector.extract_strided_slice %30 {offsets = [0, 0], sizes = [16, 64], strides = [1, 1]} : vector<16x192xf32> to vector<16x64xf32>
    %cst_13 = arith.constant 2.500000e-01 : f32
    %32 = vector.broadcast %cst_13 : f32 to vector<16x64xf32>
    %33 = arith.mulf %31, %32 : vector<16x64xf32>
    %34 = arith.truncf %33 : vector<16x64xf32> to vector<16x64xbf16>
    %35 = vector.shape_cast %34 : vector<16x64xbf16> to vector<2x8x4x16xbf16>
    %36 = tpu.transpose %35, [0, 2, 1, 3] : vector<2x8x4x16xbf16> -> vector<2x4x8x16xbf16>
    %37 = vector.shape_cast %36 : vector<2x4x8x16xbf16> to vector<8x8x16xbf16>
    %38 = vector.extract_strided_slice %30 {offsets = [0, 64], sizes = [16, 64], strides = [1, 1]} : vector<16x192xf32> to vector<16x64xf32>
    %39 = arith.truncf %38 : vector<16x64xf32> to vector<16x64xbf16>
    %40 = vector.shape_cast %39 : vector<16x64xbf16> to vector<2x8x4x16xbf16>
    %41 = tpu.transpose %40, [0, 2, 1, 3] : vector<2x8x4x16xbf16> -> vector<2x4x8x16xbf16>
    %42 = vector.shape_cast %41 : vector<2x4x8x16xbf16> to vector<8x8x16xbf16>
    %43 = vector.extract_strided_slice %30 {offsets = [0, 128], sizes = [16, 64], strides = [1, 1]} : vector<16x192xf32> to vector<16x64xf32>
    %44 = arith.truncf %43 : vector<16x64xf32> to vector<16x64xbf16>
    %45 = vector.shape_cast %44 : vector<16x64xbf16> to vector<2x8x4x16xbf16>
    %46 = tpu.transpose %45, [0, 2, 1, 3] : vector<2x8x4x16xbf16> -> vector<2x4x8x16xbf16>
    %47 = vector.shape_cast %46 : vector<2x4x8x16xbf16> to vector<8x8x16xbf16>
    "tpu.trace_start"() <{level = 10 : i32, message = "bqd,bkd->bqk"}> : () -> ()
    %cst_14 = arith.constant dense<0.000000e+00> : vector<8x8x8xf32>
    %48 = tpu.matmul %37, %42, %cst_14 {dimension_numbers = #tpu.dot_dimension_numbers<[2], [2], [1], [1], [0, 0, 0, 1, 1, 1], [0], [0]>} : vector<8x8x16xbf16>, vector<8x8x16xbf16>, vector<8x8x8xf32> -> vector<8x8x8xf32>
    "tpu.trace_stop"() : () -> ()
    %cst_15 = arith.constant dense<0xFF800000> : vector<8x8xf32>
    %49 = vector.multi_reduction <maximumf>, %48, %cst_15 [2] : vector<8x8x8xf32> to vector<8x8xf32>
    %50 = vector.shape_cast %49 : vector<8x8xf32> to vector<8x8x1xf32>
    %51 = vector.broadcast %50 : vector<8x8x1xf32> to vector<8x8x8xf32>
    %52 = arith.subf %48, %51 : vector<8x8x8xf32>
    %53 = math.exp %52 : vector<8x8x8xf32>
    %cst_16 = arith.constant dense<0.000000e+00> : vector<8x8xf32>
    %54 = vector.multi_reduction <add>, %53, %cst_16 [2] : vector<8x8x8xf32> to vector<8x8xf32>
    %55 = vector.shape_cast %54 : vector<8x8xf32> to vector<8x8x1xf32>
    %56 = tpu.reciprocal %55 {approx = true} : vector<8x8x1xf32> -> vector<8x8x1xf32>
    %57 = vector.broadcast %56 : vector<8x8x1xf32> to vector<8x8x8xf32>
    %58 = arith.mulf %53, %57 : vector<8x8x8xf32>
    %59 = arith.truncf %58 : vector<8x8x8xf32> to vector<8x8x8xbf16>
    "tpu.trace_start"() <{level = 10 : i32, message = "bqk,bkd->bqd"}> : () -> ()
    %cst_17 = arith.constant dense<0.000000e+00> : vector<8x8x16xf32>
    %60 = tpu.matmul %59, %47, %cst_17 {dimension_numbers = #tpu.dot_dimension_numbers<[2], [1], [1], [2], [0, 0, 0, 1, 1, 2], [0], [0]>} : vector<8x8x8xbf16>, vector<8x8x16xbf16>, vector<8x8x16xf32> -> vector<8x8x16xf32>
    "tpu.trace_stop"() : () -> ()
    %61 = arith.truncf %60 : vector<8x8x16xf32> to vector<8x8x16xbf16>
    %62 = vector.shape_cast %61 : vector<8x8x16xbf16> to vector<2x4x8x16xbf16>
    %63 = tpu.transpose %62, [0, 2, 1, 3] : vector<2x4x8x16xbf16> -> vector<2x8x4x16xbf16>
    %64 = vector.shape_cast %63 : vector<2x8x4x16xbf16> to vector<16x64xbf16>
    %c0_18 = arith.constant 0 : index
    %c0_19 = arith.constant 0 : index
    %65 = vector.load %arg5[%c0_18, %c0_19] : memref<64x32xbf16, #tpu.memory_space<vmem>>, vector<64x32xbf16>
    %cst_20 = arith.constant dense<0.000000e+00> : vector<16x32xf32>
    %66 = tpu.matmul %64, %65, %cst_20 {dimension_numbers = #tpu.dot_dimension_numbers<[1], [0], [0], [1], [0, 0, 1, 1], [], []>} : vector<16x64xbf16>, vector<64x32xbf16>, vector<16x32xf32> -> vector<16x32xf32>
    %c0_21 = arith.constant 0 : index
    %c0_22 = arith.constant 0 : index
    %67 = vector.load %arg6[%c0_21, %c0_22] : memref<1x32xf32, #tpu.memory_space<vmem>>, vector<1x32xf32>
    %68 = vector.broadcast %67 : vector<1x32xf32> to vector<16x32xf32>
    %69 = arith.addf %66, %68 : vector<16x32xf32>
    %70 = vector.shape_cast %69 : vector<16x32xf32> to vector<2x8x32xf32>
    %c0_23 = arith.constant 0 : index
    %c0_24 = arith.constant 0 : index
    %c0_25 = arith.constant 0 : index
    %71 = vector.load %arg7[%c0_23, %c0_24, %c0_25] : memref<2x8x32xf32, #tpu.memory_space<vmem>>, vector<2x8x32xf32>
    tpu.vector_store %arg7[%c0_23, %c0_24, %c0_25], %70 {strides = array<i32>} : memref<2x8x32xf32, #tpu.memory_space<vmem>>, vector<2x8x32xf32>,
    return
  }
  func.func @transform_0(%arg0: i32) -> (i32, i32, i32) {
    %c0_i32 = arith.constant 0 : i32
    %c0_i32_0 = arith.constant 0 : i32
    %c0_i32_1 = arith.constant 0 : i32
    return %arg0, %c0_i32, %c0_i32_0 : i32, i32, i32
  }
  func.func @transform_1(%arg0: i32) -> (i32, i32) {
    %c0_i32 = arith.constant 0 : i32
    %c0_i32_0 = arith.constant 0 : i32
    %c0_i32_1 = arith.constant 0 : i32
    return %c0_i32, %c0_i32_0 : i32, i32
  }
  func.func @transform_2(%arg0: i32) -> (i32, i32) {
    %c0_i32 = arith.constant 0 : i32
    %c0_i32_0 = arith.constant 0 : i32
    %c0_i32_1 = arith.constant 0 : i32
    return %c0_i32, %c0_i32_0 : i32, i32
  }
  func.func @transform_3(%arg0: i32) -> (i32, i32) {
    %c0_i32 = arith.constant 0 : i32
    %c0_i32_0 = arith.constant 0 : i32
    %c0_i32_1 = arith.constant 0 : i32
    return %c0_i32, %c0_i32_0 : i32, i32
  }
  func.func @transform_4(%arg0: i32) -> (i32, i32) {
    %c0_i32 = arith.constant 0 : i32
    %c0_i32_0 = arith.constant 0 : i32
    %c0_i32_1 = arith.constant 0 : i32
    return %c0_i32, %c0_i32_0 : i32, i32
  }
  func.func @transform_5(%arg0: i32) -> (i32, i32) {
    %c0_i32 = arith.constant 0 : i32
    %c0_i32_0 = arith.constant 0 : i32
    %c0_i32_1 = arith.constant 0 : i32
    return %c0_i32, %c0_i32_0 : i32, i32
  }
  func.func @transform_6(%arg0: i32) -> (i32, i32, i32) {
    %c0_i32 = arith.constant 0 : i32
    %c0_i32_0 = arith.constant 0 : i32
    %c0_i32_1 = arith.constant 0 : i32
    return %arg0, %c0_i32, %c0_i32_0 : i32, i32, i32
  }
}

</mosaic_0001>

<bundles_post_ra>
// kernel: tpu_custom_call.1
= control target key start
LH: loop header
LB: loop body
LE: loop exit
PB: predicated region body
PF: predicated region fallthrough
CT: control target
= control target key end

     0   :  { %vm27_vm0 = vcmask 261120   ;;  %s2368_s0 = inlined_call_operand.vmem [shape: f32[2,8,32], index: 0, kind: input, shape index: {}]   ;;  %s2369_s1 = inlined_call_operand.vmem [shape: f32[1,32], index: 1, kind: input, shape index: {}]   ;;  %s2370_s2 = inlined_call_operand.vmem [shape: f32[1,32], index: 2, kind: input, shape index: {}]   ;;  %s2371_s3 = inlined_call_operand.vmem [shape: bf16[32,192], index: 3, kind: input, shape index: {}]   ;;  %s2372_s4 = inlined_call_operand.vmem [shape: bf16[64,32], index: 4, kind: input, shape index: {}]   ;;  %s2373_s5 = inlined_call_operand.vmem [shape: f32[1,32], index: 5, kind: input, shape index: {}]   ;;  %s2374_s6 = inlined_call_operand.hbm [shape: f32[2,8,32], index: 6, kind: output, shape index: {}]  }
   0x1   :  { %v25_v0 = vld [vmem:[%s2368_s0] sm:$0xff] }
   0x2   :  { %v28_v1 = vsel %vm27_vm0, %v25_v0, 0.0 }
   0x3   :  { %29 = vadd.xlane.f32.xlu0 %v28_v1 }
   0x4   :  { %11 = vsyncpa [#allocation3], 0  ;;  %v26_v2 = vld [vmem:[%s2368_s0 + $0x8] sm:$0xff]  ;;  %v1781_v4 = vmov 32.0   ;;  %v1652_v21 = vld [vmem:[%s2371_s3 + $0x10] sm:$0xf] }
   0x5   :  { %v31_v3 = vsel %vm27_vm0, %v26_v2, 0.0  ;;  %1717 = vrcp.f32 %v1781_v4  ;;  %v1696_v22 = vld [vmem:[%s2371_s3 + $0x14] sm:$0xf0]  ;;  %v1695_v23 = vld [vmem:[%s2371_s3 + $0x14] sm:$0xf]  ;;  %s1784_s19 = smov 96  }
   0x6   :  { %v1653_v25 = vor.u32 %v1696_v22, %v1652_v21  ;;  %v1654_v26 = vld [vmem:[%s2371_s3 + $0x18] sm:$0xf0]  ;;  %v1644_v27 = vld [vmem:[%s2371_s3] sm:$0xf]  ;;  %v1694_v28 = vld [vmem:[%s2371_s3 + $0x4] sm:$0xf0] }
   0x7   :  { %v1657_v30 = vor.u32 %v1695_v23, %v1654_v26  ;;  %v1693_v31 = vld [vmem:[%s2371_s3 + $0x4] sm:$0xf]  ;;  %v1646_v32 = vld [vmem:[%s2371_s3 + $0x8] sm:$0xf0]  ;;  %v1645_v33 = vor.u32 %v1694_v28, %v1644_v27  ;;  %v1714_v50 = vld [vmem:[%s2369_s1] ss:$0 sm:$0xff] }
   0x8   :  { %131 = vmatpush.bf16.msra.mxu0 %v1653_v25  ;;  %v1649_v35 = vor.u32 %v1693_v31, %v1646_v32  ;;  %v1715_v54 = vld [vmem:[%s2370_s2] ss:$0 sm:$0xff]  ;;  %s1782_s1 = smov 80   ;;  %s1783_s2 = smov 112   ;;  %v1786_v23 = vmov 1983009808  }
   0x9   :  { %145 = vmatpush.bf16.msra.mxu1 %v1657_v30  ;;  %s1785_s20 = smov 64   ;;  %vm206_vm8 = vcmask 1047556   ;;  %vm904_vm9 = vcmask 130048   ;;  %vm1057_vm10 = vcmask 64512   ;;  %vm1157_vm11 = vcmask 1043456   ;;  %s1788_s21 = smov 16  }
   0xa   :  { %s1789_s22 = smov 32   ;;  %s1790_s23 = smov 48   ;;  %vm1566_vm12 = vcmask 392192   ;;  %vm1605_vm13 = vcmask 523264  }
   0xb   :  { %32 = vadd.xlane.f32.xlu0 %v31_v3  ;;  %v1718_v5 = vpop.eup %1717  ;;  %s1630_s12 = sshll.u32 %s2374_s6, 4  ;;  %s1792_s13 = smov 128   ;;  %s1631_s12 = int_to_ptr.hbm [resolvable:$true] %s1630_s12 }
   0xc   :  { %v35_v6 = vmul.f32 32.0, %v1718_v5  ;;  %vm39_vm1 = vweird.f32 %v1718_v5  ;;  %132 = vmatpush.bf16.msra.mxu0 %v1645_v33  ;;  %s1793_s14 = smov 8  }
   0xd   :  { %146 = vmatpush.bf16.msra.mxu1 %v1649_v35 }
   0xe   :  { %v36_v7 = vsub.f32 1.0, %v35_v6 }
  0x10   :  { %v37_v8 = vmul.f32 %v1718_v5, %v36_v7 }
  0x12   :  { %v38_v9 = vadd.f32 %v1718_v5, %v37_v8 }
  0x14   :  { %v40_v10 = vsel %vm39_vm1, %v1718_v5, %v38_v9 }
  0x76   :  { %v30_v11 = vpop.xlane.xlu0 %29 }
  0x77   :  { %v41_v12 = vmul.f32 %v40_v10, %v30_v11 }
  0x79   :  { %v43_v13 = vsub.f32 %v25_v0, %v41_v12 }
  0x7b   :  { %v45_v14 = vmul.f32 %v43_v13, %v43_v13 }
  0x7d   :  { %v47_v15 = vsel %vm27_vm0, %v45_v14, 0.0 }
  0x7e   :  { %48 = vadd.xlane.f32.xlu1 %v47_v15  ;;  %v33_v16 = vpop.xlane.xlu0 %32 }
  0x7f   :  { %v42_v17 = vmul.f32 %v40_v10, %v33_v16 }
  0x81   :  { %v44_v18 = vsub.f32 %v26_v2, %v42_v17 }
  0x83   :  { %v46_v19 = vmul.f32 %v44_v18, %v44_v18 }
  0x85   :  { %v50_v20 = vsel %vm27_vm0, %v46_v19, 0.0 }
  0x86   :  { %51 = vadd.xlane.f32.xlu1 %v50_v20 }
  0xf1   :  { %v49_v24 = vpop.xlane.xlu1 %48 }
  0xf2   :  { %v53_v29 = vmul.f32 %v49_v24, %v40_v10  ;;  %v197_v24 = vunpack.c.l.s4 %v1786_v23 }
  0xf4   :  { %v55_v34 = vadd.f32 1e-05, %v53_v29  ;;  %v1896_v28 = vunpack.c.0.s8 %v197_v24 }
  0xf6   :  { %1719 = vrsqrt.f32 %v55_v34  ;;  %vm63_vm3 = vweird.f32 %v55_v34 }
  0xf9   :  { %v52_v36 = vpop.xlane.xlu1 %51 }
  0xfa   :  { %v54_v37 = vmul.f32 %v52_v36, %v40_v10 }
  0xfc   :  { %v1720_v38 = vpop.eup %1719  ;;  %v56_v39 = vadd.f32 1e-05, %v54_v37 }
  0xfd   :  { %v58_v40 = vmul.f32 %v1720_v38, %v55_v34  ;;  %vm64_vm2 = vweird.f32 %v1720_v38  ;;  %v1787_v34 = vmov 1934713408  }
  0xfe   :  { %1721 = vrsqrt.f32 %v56_v39  ;;  %vm65_vm4 = vmor %vm63_vm3, %vm64_vm2  ;;  %vm73_vm6 = vweird.f32 %v56_v39  ;;  %v211_v35 = vunpack.c.l.s4 %v1787_v34 }
  0xff   :  { %v59_v41 = vmul.f32 %v1720_v38, %v58_v40 }
 0x101   :  { %v60_v42 = vmul.f32 0.5, %v59_v41 }
 0x103   :  { %v61_v43 = vsub.f32 1.5, %v60_v42 }
 0x104   :  { %v1722_v44 = vpop.eup %1721 }
 0x105   :  { %v62_v45 = vmul.f32 %v1720_v38, %v61_v43  ;;  %v68_v46 = vmul.f32 %v1722_v44, %v56_v39  ;;  %vm74_vm5 = vweird.f32 %v1722_v44 }
 0x106   :  { %vm75_vm7 = vmor %vm73_vm6, %vm74_vm5 }
 0x107   :  { %v66_v47 = vsel %vm65_vm4, %v1720_v38, %v62_v45  ;;  %v69_v48 = vmul.f32 %v1722_v44, %v68_v46 }
 0x108   :  { %v77_v49 = vmul.f32 %v66_v47, %v43_v13 }
 0x109   :  { %v70_v51 = vmul.f32 0.5, %v69_v48  ;;  %v1902_v48 = vunpack.c.0.s8 %v211_v35 }
 0x10a   :  { %v83_v53 = vmul.f32 %v1714_v50, %v77_v49 }
 0x10b   :  { %v71_v52 = vsub.f32 1.5, %v70_v51 }
 0x10c   :  { %v89_v58 = vadd.f32 %v1715_v54, %v83_v53 }
 0x10d   :  { %v72_v55 = vmul.f32 %v1722_v44, %v71_v52 }
 0x10e   :  { %v91_v61 = vpack.c.bf16 %v89_v58, %v89_v58 }
 0x10f   :  { %v76_v56 = vsel %vm75_vm7, %v1722_v44, %v72_v55 }
 0x110   :  { %v78_v57 = vmul.f32 %v76_v56, %v44_v18  ;;  %v99_v63 = vunpack.c.l.b16 %v91_v61 }
 0x112   :  { %v84_v59 = vmul.f32 %v1714_v50, %v78_v57 }
 0x114   :  { %v90_v60 = vadd.f32 %v1715_v54, %v84_v59 }
 0x116   :  { %v92_v62 = vpack.c.bf16 %v90_v60, %v90_v60 }
 0x118   :  { %v100_v0 = vunpack.c.l.b16 %v92_v62 }
 0x11a   :  { %v101_v1 = vpack.c.b16 %v100_v0, %v99_v63 }
 0x11c   :  { %1658 = vmatmul.msk.bf16.vlgmr.msra.gmra.mxu0 %vm27_vm0, %v101_v1  ;;  %1659 = vmatmul.msk.bf16.vlgmr.msra.gmra.mxu1 %vm27_vm0, %v101_v1 }
 0x199   :  { %v134_v2 = vpop.f32.mrf.mxu0  ;;  %v148_v16 = vpop.f32.mrf.mxu1 }
 0x19a   :  { %v400_v3 = vpack.c.bf16 %v134_v2, %v134_v2  ;;  %v153_v7 = vmul.f32 0.25, %v134_v2  ;;  %v1884_v17 = vpack.c.bf16 %v148_v16, %v148_v16 }
 0x19c   :  { %412 = vrot.lane.b32.xlu0 %v400_v3, %s1782_s1  ;;  %404 = vrot.lane.b32.xlu2 %v400_v3, %s1783_s2  ;;  %v155_v8 = vpack.c.bf16 %v153_v7, %v153_v7 }
 0x19e   :  { %v174_v38 = vshrl.u32 %v155_v8, 16 }
 0x1a1   :  { %v136_v4 = vpop.f32.mrf.mxu0 }
 0x1a2   :  { %v401_v5 = vpack.c.bf16 %v136_v4, %v136_v4  ;;  %v154_v13 = vmul.f32 0.25, %v136_v4 }
 0x1a4   :  { %408 = vrot.lane.b32.xlu2 %v400_v3, %s1784_s19  ;;  %406 = vrot.lane.b32.xlu1 %v401_v5, %s1783_s2  ;;  %v1879_v14 = vpack.c.bf16 %v154_v13, %v154_v13 }
 0x1a6   :  { %v186_v39 = vshrl.u32 %v1879_v14, 16 }
 0x1ac   :  { %410 = vrot.lane.b32.xlu2 %v401_v5, %s1784_s19 }
 0x1b4   :  { %414 = vrot.lane.b32.xlu2 %v401_v5, %s1782_s1 }
 0x1bc   :  { %416 = vrot.lane.b32.xlu2 %v400_v3, %s1785_s20 }
 0x1f6   :  { %v405_v6 = vpop.permute.xlu2 %404 }
 0x1f7   :  { %420 = vrot.lane.b32.xlu0 %v405_v6, %s1785_s20 }
 0x1fe   :  { %v409_v9 = vpop.permute.xlu2 %408 }
 0x1ff   :  { %159 = vrot.lane.b32.xlu0 %v155_v8, %s1783_s2  ;;  %424 = vrot.lane.b32.xlu2 %v409_v9, %s1785_s20 }
 0x206   :  { %v411_v10 = vpop.permute.xlu2 %410 }
 0x207   :  { %418 = vrot.lane.b32.xlu0 %v401_v5, %s1785_s20  ;;  %163 = vrot.lane.b32.xlu2 %v155_v8, %s1784_s19 }
 0x20e   :  { %v413_v11 = vpop.permute.xlu0 %412  ;;  %v415_v12 = vpop.permute.xlu2 %414 }
 0x20f   :  { %430 = vrot.lane.b32.xlu0 %v415_v12, %s1785_s20  ;;  %428 = vrot.lane.b32.xlu1 %v413_v11, %s1785_s20 }
 0x216   :  { %v407_v15 = vpop.permute.xlu1 %406  ;;  %v417_v18 = vpop.permute.xlu2 %416 }
 0x217   :  { %167 = vrot.lane.b32.xlu1 %v155_v8, %s1782_s1  ;;  %422 = vrot.lane.b32.xlu2 %v407_v15, %s1785_s20  ;;  %v435_v27 = vshrl.u32 %v417_v18, 16 }
 0x218   :  { %169 = vrot.lane.b32.xlu0 %v1879_v14, %s1782_s1 }
 0x21f   :  { %426 = vrot.lane.b32.xlu1 %v411_v10, %s1785_s20  ;;  %161 = vrot.lane.b32.xlu2 %v1879_v14, %s1783_s2 }
 0x220   :  { %664 = vrot.lane.b32.xlu0 %v1884_v17, %s1783_s2 }
 0x227   :  { %165 = vrot.lane.b32.xlu1 %v1879_v14, %s1784_s19  ;;  %668 = vrot.lane.b32.xlu2 %v1884_v17, %s1784_s19 }
 0x259   :  { %v425_v19 = vpop.permute.xlu2 %424 }
 0x25a   :  { %v441_v41 = vshrl.u32 %v425_v19, 16 }
 0x261   :  { %v1894_v21 = vpop.permute.xlu2 %163 }
 0x262   :  { %v180_v53 = vshrl.u32 %v1894_v21, 16 }
 0x269   :  { %v421_v20 = vpop.permute.xlu0 %420 }
 0x26a   :  { %v436_v26 = vshrl.u32 %v421_v20, 16  ;;  %v434_v29 = vpack.i.b16 %v421_v20, %v417_v18 }
 0x26c   :  { %v437_v31 = vpack.i.b16 %v436_v26, %v435_v27  ;;  %v460_v36 = vperm.slane %v434_v29, %v1896_v28 }
 0x26e   :  { %v486_v37 = vperm.slane %v437_v31, %v1896_v28  ;;  %v468_v49 = vrot.slane %v460_v36, 4 }
 0x270   :  { %v494_v54 = vrot.slane %v486_v37, 4 }
 0x271   :  { %v160_v22 = vpop.permute.xlu0 %159  ;;  %v423_v25 = vpop.permute.xlu2 %422 }
 0x272   :  { %v173_v32 = vpack.i.b16 %v160_v22, %v155_v8  ;;  %v175_v33 = vshrl.u32 %v160_v22, 16  ;;  %v448_v55 = vshrl.u32 %v423_v25, 16 }
 0x274   :  { %v176_v45 = vpack.i.b16 %v175_v33, %v174_v38  ;;  %v199_v46 = vperm.slane %v173_v32, %v1896_v28 }
 0x276   :  { %v208_v62 = vrot.slane %v199_v46, 4  ;;  %v226_v63 = vperm.slane %v176_v45, %v1896_v28 }
 0x278   :  { %v234_v15 = vrot.slane %v226_v63, 4 }
 0x279   :  { %v419_v30 = vpop.permute.xlu0 %418  ;;  %v162_v42 = vpop.permute.xlu2 %161 }
 0x27a   :  { %v447_v47 = vshrl.u32 %v419_v30, 16  ;;  %v446_v50 = vpack.i.b16 %v423_v25, %v419_v30  ;;  %v185_v56 = vpack.i.b16 %v162_v42, %v1879_v14  ;;  %v187_v57 = vshrl.u32 %v162_v42, 16 }
 0x27c   :  { %v449_v0 = vpack.i.b16 %v448_v55, %v447_v47  ;;  %v1914_v2 = vperm.slane %v446_v50, %v1896_v28  ;;  %v1919_v6 = vperm.slane %v185_v56, %v1896_v28  ;;  %v188_v11 = vpack.i.b16 %v187_v57, %v186_v39 }
 0x27e   :  { %v1926_v16 = vperm.slane %v449_v0, %v1896_v28  ;;  %v520_v25 = vrot.slane %v1914_v2, 4  ;;  %v260_v26 = vrot.slane %v1919_v6, 4  ;;  %v1935_v29 = vperm.slane %v188_v11, %v1896_v28 }
 0x280   :  { %v546_v33 = vrot.slane %v1926_v16, 4 }
 0x281   :  { %v429_v40 = vpop.permute.xlu1 %428  ;;  %v1907_v58 = vpop.permute.xlu0 %430 }
 0x282   :  { %v440_v43 = vpack.i.b16 %v429_v40, %v425_v19  ;;  %v442_v44 = vshrl.u32 %v429_v40, 16  ;;  %v454_v34 = vshrl.u32 %v1907_v58, 16 }
 0x284   :  { %v443_v51 = vpack.i.b16 %v442_v44, %v441_v41  ;;  %v465_v52 = vperm.slane %v440_v43, %v1896_v28 }
 0x286   :  { %v466_v59 = vrot.slane %v465_v52, 4  ;;  %v469_v60 = vsel %vm206_vm8, %v465_v52, %v468_v49  ;;  %v491_v61 = vperm.slane %v443_v51, %v1896_v28 }
 0x287   :  { %v477_v1 = vperm.slane %v469_v60, %v1902_v48 }
 0x288   :  { %v467_v3 = vsel %vm206_vm8, %v466_v59, %v460_v36  ;;  %v492_v4 = vrot.slane %v491_v61, 4  ;;  %v495_v5 = vsel %vm206_vm8, %v491_v61, %v494_v54 }
 0x289   :  { %v473_v7 = vperm.slane %v467_v3, %v1902_v48  ;;  %v480_v8 = vrot.slane %v477_v1, 4  ;;  %v503_v9 = vperm.slane %v495_v5, %v1902_v48  ;;  %v168_v10 = vpop.permute.xlu1 %167 }
 0x28a   :  { %v493_v12 = vsel %vm206_vm8, %v492_v4, %v486_v37  ;;  %v179_v13 = vpack.i.b16 %v168_v10, %v1894_v21  ;;  %v181_v14 = vshrl.u32 %v168_v10, 16  ;;  %v170_v41 = vpop.permute.xlu0 %169 }
 0x28b   :  { %v478_v18 = vrot.slane %v473_v7, 4  ;;  %v481_v19 = vsel %vm206_vm8, 0, %v480_v8  ;;  %v506_v20 = vrot.slane %v503_v9, 4  ;;  %v499_v21 = vperm.slane %v493_v12, %v1902_v48 }
 0x28c   :  { %v565_v22 = vrot.slane %v481_v19, 4  ;;  %v182_v23 = vpack.i.b16 %v181_v14, %v180_v53  ;;  %v204_v24 = vperm.slane %v179_v13, %v1896_v28  ;;  %v560_v47 = vsel %vm206_vm8, %v480_v8, %v473_v7 }
 0x28d   :  { %v479_v27 = vsel %vm206_vm8, 0, %v478_v18  ;;  %v1944_v37 = vsel %vm206_vm8, 0, %v506_v20  ;;  %v504_v42 = vrot.slane %v499_v21, 4  ;;  %v193_v55 = vshrl.u32 %v170_v41, 16 }
 0x28e   :  { %v205_v30 = vrot.slane %v204_v24, 4  ;;  %v209_v31 = vsel %vm206_vm8, %v204_v24, %v208_v62  ;;  %v231_v32 = vperm.slane %v182_v23, %v1896_v28  ;;  %v566_v36 = vsel %vm206_vm8, %v565_v22, %v479_v27 }
 0x28f   :  { %v217_v35 = vperm.slane %v209_v31, %v1902_v48  ;;  %v570_v52 = vperm.slane %v566_v36, %v1896_v28  ;;  %v584_v53 = vrot.slane %v1944_v37, 4  ;;  %v505_v61 = vsel %vm206_vm8, 0, %v504_v42 }
 0x290   :  { %v207_v38 = vsel %vm206_vm8, %v205_v30, %v199_v46  ;;  %v232_v39 = vrot.slane %v231_v32, 4  ;;  %v235_v40 = vsel %vm206_vm8, %v231_v32, %v234_v15  ;;  %v286_v46 = vrot.slane %v1935_v29, 4 }
 0x291   :  { %v220_v43 = vrot.slane %v217_v35, 4  ;;  %v243_v44 = vperm.slane %v235_v40, %v1902_v48  ;;  %v427_v45 = vpop.permute.xlu1 %426  ;;  %v213_v54 = vperm.slane %v207_v38, %v1902_v48  ;;  %v564_v62 = vperm.slane %v560_v47, %v1896_v28 }
 0x292   :  { %v233_v49 = vsel %vm206_vm8, %v232_v39, %v226_v63  ;;  %v452_v50 = vpack.i.b16 %v1907_v58, %v427_v45  ;;  %v453_v51 = vshrl.u32 %v427_v45, 16  ;;  %v1968_v63 = vsel %vm206_vm8, %v506_v20, %v499_v21 }
 0x293   :  { %v1957_v56 = vsel %vm206_vm8, 0, %v220_v43  ;;  %v1960_v57 = vperm.slane %v233_v49, %v1902_v48  ;;  %v1963_v58 = vrot.slane %v243_v44, 4  ;;  %v571_v4 = vrot.slane %v570_v52, 4 }
 0x294   :  { %v455_v59 = vpack.i.b16 %v454_v34, %v453_v51  ;;  %v517_v60 = vperm.slane %v452_v50, %v1896_v28  ;;  %v218_v5 = vrot.slane %v213_v54, 4  ;;  %v1973_v7 = vsel %vm206_vm8, %v220_v43, %v213_v54 }
 0x295   :  { %v305_v8 = vrot.slane %v1957_v56, 4  ;;  %v244_v10 = vrot.slane %v1960_v57, 4  ;;  %v1983_v14 = vsel %vm206_vm8, 0, %v1963_v58  ;;  %v572_v24 = vsel %vm206_vm8, %v571_v4, %v564_v62 }
 0x296   :  { %v518_v0 = vrot.slane %v517_v60, 4  ;;  %v521_v1 = vsel %vm206_vm8, %v517_v60, %v520_v25  ;;  %v543_v3 = vperm.slane %v455_v59, %v1896_v28  ;;  %v219_v31 = vsel %vm206_vm8, 0, %v218_v5 }
 0x297   :  { %v529_v9 = vperm.slane %v521_v1, %v1902_v48  ;;  %v324_v32 = vrot.slane %v1983_v14, 4  ;;  %v245_v34 = vsel %vm206_vm8, 0, %v244_v10  ;;  %v576_v37 = vperm.slane %v572_v24, %v1902_v48 }
 0x298   :  { %v519_v11 = vsel %vm206_vm8, %v518_v0, %v1914_v2  ;;  %v544_v12 = vrot.slane %v543_v3, 4  ;;  %v547_v13 = vsel %vm206_vm8, %v543_v3, %v546_v33  ;;  %v585_v45 = vsel %vm206_vm8, %v584_v53, %v505_v61 }
 0x299   :  { %v1986_v15 = vperm.slane %v519_v11, %v1902_v48  ;;  %v1988_v18 = vrot.slane %v529_v9, 4  ;;  %v555_v19 = vperm.slane %v547_v13, %v1902_v48  ;;  %v166_v20 = vpop.permute.xlu1 %165  ;;  %v583_v49 = vperm.slane %v1968_v63, %v1896_v28 }
 0x29a   :  { %v545_v22 = vsel %vm206_vm8, %v544_v12, %v1926_v16  ;;  %v191_v23 = vpack.i.b16 %v170_v41, %v166_v20  ;;  %v192_v2 = vshrl.u32 %v166_v20, 16  ;;  %v589_v50 = vperm.slane %v585_v45, %v1896_v28 }
 0x29b   :  { %v530_v25 = vrot.slane %v1986_v15, 4  ;;  %v1997_v27 = vsel %vm206_vm8, 0, %v1988_v18  ;;  %v2000_v21 = vperm.slane %v545_v22, %v1902_v48  ;;  %v2002_v30 = vrot.slane %v555_v19, 4 }
 0x29c   :  { %v194_v16 = vpack.i.b16 %v193_v55, %v192_v2  ;;  %v257_v33 = vperm.slane %v191_v23, %v1896_v28  ;;  %v603_v36 = vrot.slane %v1997_v27, 4  ;;  %v577_v51 = vrot.slane %v576_v37, 4 }
 0x29d   :  { %v2010_v35 = vsel %vm206_vm8, 0, %v2002_v30  ;;  %v2015_v38 = vsel %vm206_vm8, 0, %v530_v25  ;;  %v556_v39 = vrot.slane %v2000_v21, 4  ;;  %v590_v59 = vrot.slane %v589_v50, 4 }
 0x29e   :  { %v258_v40 = vrot.slane %v257_v33, 4  ;;  %v261_v41 = vsel %vm206_vm8, %v257_v33, %v260_v26  ;;  %v622_v42 = vrot.slane %v2010_v35, 4  ;;  %v283_v44 = vperm.slane %v194_v16, %v1896_v28 }
 0x29f   :  { %v269_v43 = vperm.slane %v261_v41, %v1902_v48  ;;  %v639_v53 = vshrl.u32 %v576_v37, 16  ;;  %v578_v60 = vsel %vm206_vm8, 0, %v577_v51  ;;  %v591_v9 = vsel %vm206_vm8, %v590_v59, %v583_v49 }
 0x2a0   :  { %v259_v47 = vsel %vm206_vm8, %v258_v40, %v1919_v6  ;;  %v284_v54 = vrot.slane %v283_v44, 4  ;;  %v287_v55 = vsel %vm206_vm8, %v283_v44, %v286_v46  ;;  %v304_v46 = vperm.slane %v1973_v7, %v1896_v28 }
 0x2a1   :  { %v265_v26 = vperm.slane %v259_v47, %v1902_v48  ;;  %v272_v52 = vrot.slane %v269_v43, 4  ;;  %v295_v56 = vperm.slane %v287_v55, %v1902_v48  ;;  %v306_v10 = vsel %vm206_vm8, %v305_v8, %v219_v31 }
 0x2a2   :  { %v285_v62 = vsel %vm206_vm8, %v284_v54, %v1935_v29  ;;  %v645_v13 = vshrl.u32 %v578_v60, 16  ;;  %v595_v20 = vperm.slane %v591_v9, %v1902_v48  ;;  %v310_v23 = vperm.slane %v306_v10, %v1896_v28 }
 0x2a3   :  { %v270_v6 = vrot.slane %v265_v26, 4  ;;  %v273_v61 = vsel %vm206_vm8, 0, %v272_v52  ;;  %v2038_v63 = vsel %vm206_vm8, %v272_v52, %v265_v26  ;;  %v291_v0 = vperm.slane %v285_v62, %v1902_v48 }
 0x2a4   :  { %v298_v1 = vrot.slane %v295_v56, 4  ;;  %v343_v3 = vrot.slane %v273_v61, 4  ;;  %v342_v5 = vperm.slane %v2038_v63, %v1896_v28  ;;  %v319_v8 = vsel %vm206_vm8, %v1963_v58, %v1960_v57 }
 0x2a5   :  { %v271_v4 = vsel %vm206_vm8, 0, %v270_v6  ;;  %v296_v29 = vrot.slane %v291_v0, 4  ;;  %v325_v2 = vsel %vm206_vm8, %v324_v32, %v245_v34  ;;  %v638_v25 = vpack.i.b16 %v595_v20, %v576_v37 }
 0x2a6   :  { %v299_v11 = vsel %vm206_vm8, 0, %v298_v1  ;;  %v344_v12 = vsel %vm206_vm8, %v343_v3, %v271_v4  ;;  %v2052_v19 = vsel %vm206_vm8, %v298_v1, %v291_v0  ;;  %v640_v31 = vshrl.u32 %v595_v20, 16 }
 0x2a7   :  { %v348_v14 = vperm.slane %v344_v12, %v1896_v28  ;;  %v362_v7 = vrot.slane %v299_v11, 4  ;;  %v297_v22 = vsel %vm206_vm8, 0, %v296_v29  ;;  %v596_v16 = vrot.slane %v595_v20, 4 }
 0x2a8   :  { %v311_v33 = vrot.slane %v310_v23, 4  ;;  %v323_v40 = vperm.slane %v319_v8, %v1896_v28  ;;  %v329_v41 = vperm.slane %v325_v2, %v1896_v28  ;;  %v557_v43 = vsel %vm206_vm8, 0, %v556_v39 }
 0x2a9   :  { %v363_v24 = vsel %vm206_vm8, %v362_v7, %v297_v22  ;;  %v909_v44 = vsel %vm904_vm9, %v638_v25, 0  ;;  %v641_v45 = vpack.i.b16 %v640_v31, %v639_v53  ;;  %v597_v47 = vsel %vm206_vm8, 0, %v596_v16 }
 0x2aa   :  { %v598_v57 = vsel %vm206_vm8, %v1988_v18, %v1986_v15  ;;  %918 = vmatpush.bf16.xpose.msra.mxu2 %v909_v44  ;;  %v644_v58 = vpack.i.b16 %v597_v47, %v578_v60  ;;  %v646_v32 = vshrl.u32 %v597_v47, 16  ;;  %v312_v34 = vsel %vm206_vm8, %v311_v33, %v304_v46 }
 0x2ab   :  { %v330_v37 = vrot.slane %v329_v41, 4  ;;  %v928_v49 = vsel %vm904_vm9, %v641_v45, 0  ;;  %v316_v50 = vperm.slane %v312_v34, %v1902_v48  ;;  %v602_v39 = vperm.slane %v598_v57, %v1896_v28 }
 0x2ac   :  { %v604_v51 = vsel %vm206_vm8, %v603_v36, %v2015_v38  ;;  %937 = vmatpush.bf16.xpose.msra.mxu3 %v928_v49  ;;  %v947_v15 = vsel %vm904_vm9, %v644_v58, 0  ;;  %v647_v18 = vpack.i.b16 %v646_v32, %v645_v13  ;;  %v617_v59 = vsel %vm206_vm8, %v2002_v30, %v2000_v21 }
 0x2ad   :  { %v331_v26 = vsel %vm206_vm8, %v330_v37, %v323_v40  ;;  %v608_v52 = vperm.slane %v604_v51, %v1896_v28  ;;  %956 = vmatpush.bf16.xpose.msrb.mxu0 %v947_v15  ;;  %v379_v55 = vshrl.u32 %v316_v50, 16  ;;  %v317_v56 = vrot.slane %v316_v50, 4 }
 0x2ae   :  { %v335_v54 = vperm.slane %v331_v26, %v1902_v48  ;;  %v966_v27 = vsel %vm904_vm9, %v647_v18, 0  ;;  %v621_v38 = vperm.slane %v617_v59, %v1896_v28  ;;  %v623_v53 = vsel %vm206_vm8, %v622_v42, %v557_v43 }
 0x2af   :  { %v609_v36 = vrot.slane %v608_v52, 4  ;;  %975 = vmatpush.bf16.xpose.msrb.mxu1 %v966_v27  ;;  %v318_v61 = vsel %vm206_vm8, 0, %v317_v56  ;;  %v627_v21 = vperm.slane %v623_v53, %v1896_v28  ;;  %v349_v30 = vrot.slane %v348_v14, 4  ;;  %v150_v52 = vpop.f32.mrf.mxu1 }
 0x2b0   :  { %v378_v60 = vpack.i.b16 %v335_v54, %v316_v50  ;;  %v380_v6 = vshrl.u32 %v335_v54, 16  ;;  %v336_v62 = vrot.slane %v335_v54, 4  ;;  %v385_v0 = vshrl.u32 %v318_v61, 16 }
 0x2b1   :  { %v610_v1 = vsel %vm206_vm8, %v609_v36, %v602_v39  ;;  %v367_v42 = vperm.slane %v363_v24, %v1896_v28  ;;  %v628_v10 = vrot.slane %v627_v21, 4  ;;  %v350_v29 = vsel %vm206_vm8, %v349_v30, %v342_v5 }
 0x2b2   :  { %1660 = vmatmul.msk.bf16.vlgmr.msra.gmra.mxu2 %vm904_vm9, %v378_v60  ;;  %v381_v3 = vpack.i.b16 %v380_v6, %v379_v55  ;;  %v337_v46 = vsel %vm206_vm8, 0, %v336_v62  ;;  %v614_v35 = vperm.slane %v610_v1, %v1902_v48  ;;  %v361_v11 = vperm.slane %v2052_v19, %v1896_v28 }
 0x2b3   :  { %v384_v4 = vpack.i.b16 %v337_v46, %v318_v61  ;;  %v386_v9 = vshrl.u32 %v337_v46, 16  ;;  %v368_v13 = vrot.slane %v367_v42, 4  ;;  %v629_v7 = vsel %vm206_vm8, %v628_v10, %v621_v38 }
 0x2b4   :  { %1661 = vmatmul.msk.bf16.vlgmr.msra.gmra.mxu3 %vm904_vm9, %v381_v3  ;;  %v615_v12 = vrot.slane %v614_v35, 4  ;;  %v633_v20 = vperm.slane %v629_v7, %v1902_v48  ;;  %v354_v22 = vperm.slane %v350_v29, %v1902_v48  ;;  %v651_v5 = vshrl.u32 %v614_v35, 16 }
 0x2b5   :  { %1662 = vmatmul.msk.bf16.vlgmr.msrb.gmra.mxu0 %vm904_vm9, %v384_v4  ;;  %v387_v14 = vpack.i.b16 %v386_v9, %v385_v0  ;;  %v369_v63 = vsel %vm206_vm8, %v368_v13, %v361_v11  ;;  %v2129_v46 = vpack.c.bf16 %v150_v52, %v150_v52  ;;  %v2144_v13 = vpop.permute.xlu2 %668 }
 0x2b6   :  { %v373_v19 = vperm.slane %v369_v63, %v1902_v48  ;;  %v650_v23 = vpack.i.b16 %v633_v20, %v614_v35  ;;  %v652_v8 = vshrl.u32 %v633_v20, 16  ;;  %v616_v2 = vsel %vm206_vm8, 0, %v615_v12  ;;  %v665_v12 = vpop.permute.xlu0 %664 }
 0x2b7   :  { %1663 = vmatmul.msk.bf16.vlgmr.msrb.gmra.mxu1 %vm904_vm9, %v387_v14  ;;  %v634_v24 = vrot.slane %v633_v20, 4  ;;  %v355_v40 = vrot.slane %v354_v22, 4  ;;  %v657_v43 = vshrl.u32 %v616_v2, 16  ;;  %v391_v37 = vshrl.u32 %v354_v22, 16 }
 0x2b8   :  { %v374_v25 = vrot.slane %v373_v19, 4  ;;  %v985_v31 = vsel %vm904_vm9, %v650_v23, 0  ;;  %v653_v16 = vpack.i.b16 %v652_v8, %v651_v5  ;;  %v392_v47 = vshrl.u32 %v373_v19, 16 }
 0x2b9   :  { %v635_v33 = vsel %vm206_vm8, 0, %v634_v24  ;;  %994 = vmatpush.bf16.xpose.msrb.mxu2 %v985_v31  ;;  %v390_v34 = vpack.i.b16 %v373_v19, %v354_v22  ;;  %v356_v49 = vsel %vm206_vm8, 0, %v355_v40 }
 0x2ba   :  { %v656_v41 = vpack.i.b16 %v635_v33, %v616_v2  ;;  %v658_v44 = vshrl.u32 %v635_v33, 16  ;;  %v1004_v45 = vsel %vm904_vm9, %v653_v16, 0  ;;  %v375_v57 = vsel %vm206_vm8, 0, %v374_v25 }
 0x2bb   :  { %1013 = vmatpush.bf16.xpose.msrb.mxu3 %v1004_v45  ;;  %v398_v39 = vshrl.u32 %v375_v57, 16  ;;  %v393_v51 = vpack.i.b16 %v392_v47, %v391_v37  ;;  %v396_v15 = vpack.i.b16 %v375_v57, %v356_v49  ;;  %v397_v18 = vshrl.u32 %v356_v49, 16 }
 0x2bc   :  { %v1023_v58 = vsel %vm904_vm9, %v656_v41, 0  ;;  %v659_v32 = vpack.i.b16 %v658_v44, %v657_v43 }
 0x2bd   :  { %1032 = vmatpush.bf16.xpose.msra.mxu0 %v1023_v58  ;;  %v399_v26 = vpack.i.b16 %v398_v39, %v397_v18 }
 0x2be   :  { %v1042_v50 = vsel %vm904_vm9, %v659_v32, 0 }
 0x2bf   :  { %1051 = vmatpush.bf16.xpose.msra.mxu1 %v1042_v50 }
 0x2c2   :  { %1664 = vmatmul.msk.bf16.vlgmr.msrb.gmra.mxu2 %vm904_vm9, %v390_v34 }
 0x2c4   :  { %1665 = vmatmul.msk.bf16.vlgmr.msrb.gmra.mxu3 %vm904_vm9, %v393_v51 }
 0x2c5   :  { %1666 = vmatmul.msk.bf16.vlgmr.msra.gmra.mxu0 %vm904_vm9, %v396_v15 }
 0x2c7   :  { %1667 = vmatmul.msk.bf16.vlgmr.msra.gmra.mxu1 %vm904_vm9, %v399_v26 }
 0x332   :  { %v958_v54 = vpop.f32.mrf.mxu0 }
 0x333   :  { %v1064_v55 = vsel %vm1057_vm10, %v958_v54, -inf }
 0x334   :  { %v977_v56 = vpop.f32.mrf.mxu1  ;;  %1065 = vmax.xlane.f32.xlu0 %v1064_v55  ;;  %v679_v55 = vshrl.u32 %v1884_v17, 16 }
 0x335   :  { %v920_v59 = vpop.f32.mrf.mxu2  ;;  %v1067_v27 = vsel %vm1057_vm10, %v977_v56, -inf }
 0x336   :  { %1068 = vmax.xlane.f32.xlu2 %v1067_v27  ;;  %v1058_v61 = vsel %vm1057_vm10, %v920_v59, -inf }
 0x337   :  { %v939_v36 = vpop.f32.mrf.mxu3 }
 0x338   :  { %v1061_v38 = vsel %vm1057_vm10, %v939_v36, -inf }
 0x339   :  { %1062 = vmax.xlane.f32.xlu1 %v1061_v38 }
 0x33a   :  { %v960_v53 = vpop.f32.mrf.mxu0 }
 0x33b   :  { %v685_v53 = vshrl.u32 %v2144_v13, 16 }
 0x33c   :  { %v979_v60 = vpop.f32.mrf.mxu1 }
 0x33d   :  { %v922_v6 = vpop.f32.mrf.mxu2 }
 0x33e   :  { %1059 = vmax.xlane.f32.xlu2 %v1058_v61 }
 0x33f   :  { %v941_v62 = vpop.f32.mrf.mxu3 }
 0x342   :  { %v1034_v0 = vpop.f32.mrf.mxu0 }
 0x343   :  { %v1076_v3 = vsel %vm1057_vm10, %v1034_v0, -inf }
 0x344   :  { %v1053_v1 = vpop.f32.mrf.mxu1 }
 0x345   :  { %v996_v21 = vpop.f32.mrf.mxu2  ;;  %v1079_v30 = vsel %vm1057_vm10, %v1053_v1, -inf }
 0x346   :  { %1080 = vmax.xlane.f32.xlu1 %v1079_v30  ;;  %1077 = vmax.xlane.f32.xlu2 %v1076_v3  ;;  %v1070_v10 = vsel %vm1057_vm10, %v996_v21, -inf }
 0x347   :  { %v2131_v35 = vpop.f32.mrf.mxu3 }
 0x348   :  { %666 = vrot.lane.b32.xlu0 %v2129_v46, %s1783_s2  ;;  %v1073_v11 = vsel %vm1057_vm10, %v2131_v35, -inf }
 0x34a   :  { %v1036_v42 = vpop.f32.mrf.mxu0 }
 0x34c   :  { %v1055_v4 = vpop.f32.mrf.mxu1 }
 0x34d   :  { %v998_v9 = vpop.f32.mrf.mxu2 }
 0x34e   :  { %1071 = vmax.xlane.f32.xlu1 %v1070_v10 }
 0x34f   :  { %v1017_v29 = vpop.f32.mrf.mxu3 }
 0x35e   :  { %670 = vrot.lane.b32.xlu2 %v2129_v46, %s1784_s19 }
 0x367   :  { %672 = vrot.lane.b32.xlu1 %v1884_v17, %s1782_s1 }
 0x372   :  { %1074 = vmax.xlane.f32.xlu0 %v1073_v11 }
 0x386   :  { %674 = vrot.lane.b32.xlu0 %v2129_v46, %s1782_s1 }
 0x3a7   :  { %v1066_v14 = vpop.xlane.xlu0 %1065 }
 0x3a8   :  { %v1084_v7 = vsub.f32 %v958_v54, %v1066_v14  ;;  %v680_v54 = vshrl.u32 %v665_v12, 16 }
 0x3a9   :  { %v1069_v20 = vpop.xlane.xlu2 %1068 }
 0x3aa   :  { %v1094_v22 = vmul.f32 1.442695, %v1084_v7  ;;  %v1085_v25 = vsub.f32 %v977_v56, %v1069_v20  ;;  %v678_v56 = vpack.i.b16 %v665_v12, %v1884_v17  ;;  %v681_v27 = vpack.i.b16 %v680_v54, %v679_v55 }
 0x3ac   :  { %1723 = vpow2.f32 %v1094_v22  ;;  %v1063_v63 = vpop.xlane.xlu1 %1062  ;;  %v1096_v33 = vmul.f32 1.442695, %v1085_v25  ;;  %v730_v60 = vperm.slane %v681_v27, %v1896_v28 }
 0x3ad   :  { %v1083_v5 = vsub.f32 %v939_v36, %v1063_v63  ;;  %v704_v36 = vperm.slane %v678_v56, %v1896_v28 }
 0x3af   :  { %v1092_v19 = vmul.f32 1.442695, %v1083_v5  ;;  %v712_v62 = vrot.slane %v704_v36, 4 }
 0x3b1   :  { %1725 = vpow2.f32 %v1092_v19  ;;  %v1060_v23 = vpop.xlane.xlu2 %1059 }
 0x3b2   :  { %v2146_v8 = vpop.eup %1723  ;;  %v1082_v2 = vsub.f32 %v920_v59, %v1060_v23 }
 0x3b3   :  { %v1112_v24 = vsel %vm1057_vm10, %v2146_v8, 0.0 }
 0x3b4   :  { %v1090_v31 = vmul.f32 1.442695, %v1082_v2  ;;  %1113 = vadd.xlane.f32.xlu0 %v1112_v24 }
 0x3b6   :  { %1727 = vpow2.f32 %v1090_v31 }
 0x3b7   :  { %v2150_v16 = vpop.eup %1725  ;;  %1729 = vpow2.f32 %v1096_v33 }
 0x3b8   :  { %v1109_v40 = vsel %vm1057_vm10, %v2150_v16, 0.0 }
 0x3b9   :  { %v1081_v41 = vpop.xlane.xlu1 %1080  ;;  %1110 = vadd.xlane.f32.xlu2 %v1109_v40  ;;  %v1078_v43 = vpop.xlane.xlu2 %1077 }
 0x3ba   :  { %v1088_v45 = vsub.f32 %v1034_v0, %v1078_v43  ;;  %v1089_v37 = vsub.f32 %v1053_v1, %v1081_v41  ;;  %v2181_v17 = vpop.permute.xlu0 %666 }
 0x3bc   :  { %v2154_v44 = vpop.eup %1727  ;;  %v1102_v57 = vmul.f32 1.442695, %v1088_v45  ;;  %v1104_v39 = vmul.f32 1.442695, %v1089_v37 }
 0x3bd   :  { %v1106_v47 = vsel %vm1057_vm10, %v2154_v44, 0.0  ;;  %v2158_v32 = vpop.eup %1729 }
 0x3be   :  { %1107 = vadd.xlane.f32.xlu1 %v1106_v47  ;;  %1731 = vpow2.f32 %v1102_v57  ;;  %v1115_v50 = vsel %vm1057_vm10, %v2158_v32, 0.0 }
 0x3c1   :  { %v1072_v58 = vpop.xlane.xlu1 %1071 }
 0x3c2   :  { %v1086_v34 = vsub.f32 %v996_v21, %v1072_v58  ;;  %v738_v21 = vrot.slane %v730_v60, 4 }
 0x3c4   :  { %v1098_v49 = vmul.f32 1.442695, %v1086_v34  ;;  %v2162_v51 = vpop.eup %1731 }
 0x3c5   :  { %v1124_v26 = vsel %vm1057_vm10, %v2162_v51, 0.0 }
 0x3c6   :  { %1733 = vpow2.f32 %v1098_v49  ;;  %1116 = vadd.xlane.f32.xlu1 %v1115_v50 }
 0x3c7   :  { %1735 = vpow2.f32 %v1104_v39 }
 0x3cc   :  { %v2164_v15 = vpop.eup %1733 }
 0x3cd   :  { %v1118_v18 = vsel %vm1057_vm10, %v2164_v15, 0.0  ;;  %v2170_v52 = vpop.eup %1735 }
 0x3ce   :  { %1119 = vadd.xlane.f32.xlu2 %v1118_v18  ;;  %1125 = vadd.xlane.f32.xlu1 %v1124_v26  ;;  %v1127_v59 = vsel %vm1057_vm10, %v2170_v52, 0.0 }
 0x3d6   :  { %1128 = vadd.xlane.f32.xlu2 %v1127_v59 }
 0x3d9   :  { %v673_v38 = vpop.permute.xlu1 %672 }
 0x3da   :  { %v684_v6 = vpack.i.b16 %v673_v38, %v2144_v13  ;;  %v686_v61 = vshrl.u32 %v673_v38, 16 }
 0x3dc   :  { %v687_v0 = vpack.i.b16 %v686_v61, %v685_v53  ;;  %v709_v1 = vperm.slane %v684_v6, %v1896_v28  ;;  %v692_v53 = vshrl.u32 %v2181_v17, 16  ;;  %v691_v6 = vshrl.u32 %v2129_v46, 16 }
 0x3de   :  { %v710_v30 = vrot.slane %v709_v1, 4  ;;  %v713_v3 = vsel %vm206_vm8, %v709_v1, %v712_v62  ;;  %v735_v42 = vperm.slane %v687_v0, %v1896_v28  ;;  %v690_v1 = vpack.i.b16 %v2181_v17, %v2129_v46 }
 0x3df   :  { %v721_v4 = vperm.slane %v713_v3, %v1902_v48 }
 0x3e0   :  { %v711_v9 = vsel %vm206_vm8, %v710_v30, %v704_v36  ;;  %v736_v10 = vrot.slane %v735_v42, 4  ;;  %v739_v29 = vsel %vm206_vm8, %v735_v42, %v738_v21 }
 0x3e1   :  { %v717_v11 = vperm.slane %v711_v9, %v1902_v48  ;;  %v724_v12 = vrot.slane %v721_v4, 4  ;;  %v747_v13 = vperm.slane %v739_v29, %v1902_v48  ;;  %v693_v4 = vpack.i.b16 %v692_v53, %v691_v6  ;;  %v671_v29 = vpop.permute.xlu2 %670 }
 0x3e2   :  { %v737_v14 = vsel %vm206_vm8, %v736_v10, %v730_v60  ;;  %v697_v17 = vshrl.u32 %v671_v29, 16 }
 0x3e3   :  { %v722_v7 = vrot.slane %v717_v11, 4  ;;  %v725_v20 = vsel %vm206_vm8, 0, %v724_v12  ;;  %v743_v22 = vperm.slane %v737_v14, %v1902_v48  ;;  %v750_v63 = vrot.slane %v747_v13, 4 }
 0x3e4   :  { %v809_v5 = vrot.slane %v725_v20, 4  ;;  %v804_v25 = vsel %vm206_vm8, %v724_v12, %v717_v11  ;;  %v756_v11 = vperm.slane %v690_v1, %v1896_v28  ;;  %v782_v46 = vperm.slane %v693_v4, %v1896_v28 }
 0x3e5   :  { %v723_v19 = vsel %vm206_vm8, 0, %v722_v7  ;;  %v748_v23 = vrot.slane %v743_v22, 4  ;;  %v751_v2 = vsel %vm206_vm8, 0, %v750_v63  ;;  %v1075_v24 = vpop.xlane.xlu0 %1074  ;;  %v823_v45 = vsel %vm206_vm8, %v750_v63, %v743_v22 }
 0x3e6   :  { %v810_v31 = vsel %vm206_vm8, %v809_v5, %v723_v19  ;;  %v828_v33 = vrot.slane %v751_v2, 4  ;;  %v1087_v40 = vsub.f32 %v2131_v35, %v1075_v24  ;;  %v808_v58 = vperm.slane %v804_v25, %v1896_v28 }
 0x3e7   :  { %v749_v41 = vsel %vm206_vm8, 0, %v748_v23  ;;  %v814_v43 = vperm.slane %v810_v31, %v1896_v28  ;;  %v827_v50 = vperm.slane %v823_v45, %v1896_v28  ;;  %v764_v20 = vrot.slane %v756_v11, 4 }
 0x3e8   :  { %v1100_v47 = vmul.f32 1.442695, %v1087_v40  ;;  %v829_v57 = vsel %vm206_vm8, %v828_v33, %v749_v41  ;;  %v790_v5 = vrot.slane %v782_v46, 4 }
 0x3e9   :  { %v815_v34 = vrot.slane %v814_v43, 4  ;;  %v833_v37 = vperm.slane %v829_v57, %v1896_v28 }
 0x3ea   :  { %1737 = vpow2.f32 %v1100_v47 }
 0x3eb   :  { %v816_v49 = vsel %vm206_vm8, %v815_v34, %v808_v58  ;;  %v834_v35 = vrot.slane %v833_v37, 4 }
 0x3ec   :  { %v820_v39 = vperm.slane %v816_v49, %v1902_v48 }
 0x3ed   :  { %v835_v18 = vsel %vm206_vm8, %v834_v35, %v827_v50 }
 0x3ee   :  { %v839_v26 = vperm.slane %v835_v18, %v1902_v48  ;;  %v821_v54 = vrot.slane %v820_v39, 4  ;;  %v883_v55 = vshrl.u32 %v820_v39, 16 }
 0x3f0   :  { %v2209_v56 = vpop.eup %1737  ;;  %v882_v59 = vpack.i.b16 %v839_v26, %v820_v39  ;;  %v884_v27 = vshrl.u32 %v839_v26, 16  ;;  %v822_v36 = vsel %vm206_vm8, 0, %v821_v54  ;;  %v840_v38 = vrot.slane %v839_v26, 4 }
 0x3f1   :  { %v1121_v60 = vsel %vm1057_vm10, %v2209_v56, 0.0  ;;  %v889_v30 = vshrl.u32 %v822_v36, 16 }
 0x3f2   :  { %1122 = vadd.xlane.f32.xlu0 %v1121_v60  ;;  %v1159_v61 = vsel %vm1157_vm11, %v882_v59, 0  ;;  %v885_v62 = vpack.i.b16 %v884_v27, %v883_v55  ;;  %v841_v0 = vsel %vm206_vm8, 0, %v840_v38 }
 0x3f3   :  { %1168 = vmatpush.bf16.msra.mxu2 %v1159_v61  ;;  %v888_v21 = vpack.i.b16 %v841_v0, %v822_v36  ;;  %v890_v3 = vshrl.u32 %v841_v0, 16 }
 0x3f4   :  { %v1178_v42 = vsel %vm1157_vm11, %v885_v62, 0 }
 0x3f5   :  { %1187 = vmatpush.bf16.msra.mxu3 %v1178_v42  ;;  %v1197_v9 = vsel %vm1157_vm11, %v888_v21, 0  ;;  %v891_v10 = vpack.i.b16 %v890_v3, %v889_v30 }
 0x3f6   :  { %1206 = vmatpush.bf16.msrb.mxu0 %v1197_v9 }
 0x3f7   :  { %v1216_v12 = vsel %vm1157_vm11, %v891_v10, 0 }
 0x3f8   :  { %v675_v13 = vpop.permute.xlu0 %674  ;;  %1225 = vmatpush.bf16.msrb.mxu1 %v1216_v12 }
 0x3f9   :  { %v696_v14 = vpack.i.b16 %v675_v13, %v671_v29  ;;  %v698_v7 = vshrl.u32 %v675_v13, 16 }
 0x3fb   :  { %v699_v22 = vpack.i.b16 %v698_v7, %v697_v17  ;;  %v761_v63 = vperm.slane %v696_v14, %v1896_v28 }
 0x3fd   :  { %v762_v19 = vrot.slane %v761_v63, 4  ;;  %v765_v23 = vsel %vm206_vm8, %v761_v63, %v764_v20  ;;  %v787_v2 = vperm.slane %v699_v22, %v1896_v28 }
 0x3fe   :  { %v773_v24 = vperm.slane %v765_v23, %v1902_v48 }
 0x3ff   :  { %v763_v25 = vsel %vm206_vm8, %v762_v19, %v756_v11  ;;  %v788_v31 = vrot.slane %v787_v2, 4  ;;  %v791_v33 = vsel %vm206_vm8, %v787_v2, %v790_v5 }
 0x400   :  { %v769_v40 = vperm.slane %v763_v25, %v1902_v48  ;;  %v776_v41 = vrot.slane %v773_v24, 4  ;;  %v799_v43 = vperm.slane %v791_v33, %v1902_v48 }
 0x401   :  { %v789_v45 = vsel %vm206_vm8, %v788_v31, %v782_v46 }
 0x402   :  { %v774_v47 = vrot.slane %v769_v40, 4  ;;  %v777_v57 = vsel %vm206_vm8, 0, %v776_v41  ;;  %v795_v58 = vperm.slane %v789_v45, %v1902_v48  ;;  %v802_v34 = vrot.slane %v799_v43, 4 }
 0x403   :  { %v847_v37 = vrot.slane %v777_v57, 4  ;;  %v842_v39 = vsel %vm206_vm8, %v776_v41, %v769_v40 }
 0x404   :  { %v775_v49 = vsel %vm206_vm8, 0, %v774_v47  ;;  %v800_v50 = vrot.slane %v795_v58, 4  ;;  %v803_v35 = vsel %vm206_vm8, 0, %v802_v34  ;;  %v861_v59 = vsel %vm206_vm8, %v802_v34, %v795_v58 }
 0x405   :  { %v848_v18 = vsel %vm206_vm8, %v847_v37, %v775_v49  ;;  %v866_v26 = vrot.slane %v803_v35, 4  ;;  %v846_v36 = vperm.slane %v842_v39, %v1896_v28  ;;  %v865_v6 = vperm.slane %v861_v59, %v1896_v28 }
 0x406   :  { %v801_v54 = vsel %vm206_vm8, 0, %v800_v50  ;;  %v852_v55 = vperm.slane %v848_v18, %v1896_v28 }
 0x407   :  { %v867_v27 = vsel %vm206_vm8, %v866_v26, %v801_v54 }
 0x408   :  { %v853_v38 = vrot.slane %v852_v55, 4  ;;  %v871_v53 = vperm.slane %v867_v27, %v1896_v28 }
 0x40a   :  { %v854_v60 = vsel %vm206_vm8, %v853_v38, %v846_v36  ;;  %v872_v61 = vrot.slane %v871_v53, 4 }
 0x40b   :  { %v858_v62 = vperm.slane %v854_v60, %v1902_v48 }
 0x40c   :  { %v873_v0 = vsel %vm206_vm8, %v872_v61, %v865_v6 }
 0x40d   :  { %v877_v1 = vperm.slane %v873_v0, %v1902_v48  ;;  %v859_v21 = vrot.slane %v858_v62, 4  ;;  %v895_v30 = vshrl.u32 %v858_v62, 16 }
 0x40f   :  { %v894_v3 = vpack.i.b16 %v877_v1, %v858_v62  ;;  %v896_v42 = vshrl.u32 %v877_v1, 16  ;;  %v860_v4 = vsel %vm206_vm8, 0, %v859_v21  ;;  %v878_v9 = vrot.slane %v877_v1, 4 }
 0x410   :  { %v901_v13 = vshrl.u32 %v860_v4, 16 }
 0x411   :  { %v1235_v10 = vsel %vm1157_vm11, %v894_v3, 0  ;;  %v897_v29 = vpack.i.b16 %v896_v42, %v895_v30  ;;  %v879_v11 = vsel %vm206_vm8, 0, %v878_v9 }
 0x412   :  { %1244 = vmatpush.bf16.msrb.mxu2 %v1235_v10  ;;  %v900_v12 = vpack.i.b16 %v879_v11, %v860_v4  ;;  %v902_v46 = vshrl.u32 %v879_v11, 16 }
 0x413   :  { %v1254_v17 = vsel %vm1157_vm11, %v897_v29, 0 }
 0x414   :  { %1263 = vmatpush.bf16.msrb.mxu3 %v1254_v17  ;;  %v1273_v14 = vsel %vm1157_vm11, %v900_v12, 0  ;;  %v903_v7 = vpack.i.b16 %v902_v46, %v901_v13 }
 0x415   :  { %1282 = vmatpush.bf16.msra.mxu0 %v1273_v14 }
 0x416   :  { %v1292_v20 = vsel %vm1157_vm11, %v903_v7, 0 }
 0x417   :  { %1301 = vmatpush.bf16.msra.mxu1 %v1292_v20 }
 0x427   :  { %v1114_v22 = vpop.xlane.xlu0 %1113 }
 0x428   :  { %1739 = vrcp.f32 %v1114_v22 }
 0x42c   :  { %v1111_v63 = vpop.xlane.xlu2 %1110 }
 0x42d   :  { %1741 = vrcp.f32 %v1111_v63 }
 0x42e   :  { %v1740_v5 = vpop.eup %1739 }
 0x42f   :  { %v1140_v19 = vmul.f32 %v1740_v5, %v2146_v8 }
 0x431   :  { %v1148_v23 = vpack.c.bf16 %v1140_v19, %v1140_v19  ;;  %v1108_v2 = vpop.xlane.xlu1 %1107 }
 0x432   :  { %1743 = vrcp.f32 %v1108_v2 }
 0x433   :  { %v1742_v24 = vpop.eup %1741  ;;  %1670 = vmatmul.msk.bf16.vlgmr.msrb.gmra.mxu0 %vm1057_vm10, %v1148_v23 }
 0x434   :  { %v1139_v25 = vmul.f32 %v1742_v24, %v2150_v16 }
 0x436   :  { %v1147_v31 = vpack.c.bf16 %v1139_v25, %v1139_v25 }
 0x438   :  { %v1744_v33 = vpop.eup %1743  ;;  %1669 = vmatmul.msk.bf16.vlgmr.msra.gmra.mxu3 %vm1057_vm10, %v1147_v31 }
 0x439   :  { %v1138_v40 = vmul.f32 %v1744_v33, %v2154_v44  ;;  %v1117_v41 = vpop.xlane.xlu1 %1116 }
 0x43a   :  { %1745 = vrcp.f32 %v1117_v41 }
 0x43b   :  { %v1146_v43 = vpack.c.bf16 %v1138_v40, %v1138_v40 }
 0x43d   :  { %1668 = vmatmul.msk.bf16.vlgmr.msra.gmra.mxu2 %vm1057_vm10, %v1146_v43 }
 0x440   :  { %v1746_v8 = vpop.eup %1745 }
 0x441   :  { %v1141_v45 = vmul.f32 %v1746_v8, %v2158_v32  ;;  %v1126_v47 = vpop.xlane.xlu1 %1125  ;;  %v1120_v57 = vpop.xlane.xlu2 %1119 }
 0x442   :  { %1747 = vrcp.f32 %v1126_v47 }
 0x443   :  { %v1149_v58 = vpack.c.bf16 %v1141_v45, %v1141_v45  ;;  %1749 = vrcp.f32 %v1120_v57 }
 0x445   :  { %1671 = vmatmul.msk.bf16.vlgmr.msrb.gmra.mxu1 %vm1057_vm10, %v1149_v58 }
 0x448   :  { %v1748_v16 = vpop.eup %1747 }
 0x449   :  { %v1750_v34 = vpop.eup %1749  ;;  %v1144_v37 = vmul.f32 %v1748_v16, %v2162_v51  ;;  %v1129_v44 = vpop.xlane.xlu2 %1128 }
 0x44a   :  { %v1142_v49 = vmul.f32 %v1750_v34, %v2164_v15  ;;  %1751 = vrcp.f32 %v1129_v44 }
 0x44b   :  { %v1152_v50 = vpack.c.bf16 %v1144_v37, %v1144_v37 }
 0x44c   :  { %v1150_v35 = vpack.c.bf16 %v1142_v49, %v1142_v49 }
 0x44d   :  { %1674 = vmatmul.msk.bf16.vlgmr.msra.gmra.mxu0 %vm1057_vm10, %v1152_v50 }
 0x44e   :  { %1672 = vmatmul.msk.bf16.vlgmr.msrb.gmra.mxu2 %vm1057_vm10, %v1150_v35 }
 0x450   :  { %v1752_v32 = vpop.eup %1751 }
 0x451   :  { %v1145_v39 = vmul.f32 %v1752_v32, %v2170_v52 }
 0x453   :  { %v1153_v18 = vpack.c.bf16 %v1145_v39, %v1145_v39 }
 0x455   :  { %1675 = vmatmul.msk.bf16.vlgmr.msra.gmra.mxu1 %vm1057_vm10, %v1153_v18 }
 0x465   :  { %v1123_v26 = vpop.xlane.xlu0 %1122 }
 0x466   :  { %1753 = vrcp.f32 %v1123_v26 }
 0x46c   :  { %v1754_v54 = vpop.eup %1753 }
 0x46d   :  { %v1143_v51 = vmul.f32 %v1754_v54, %v2209_v56 }
 0x46f   :  { %v1151_v55 = vpack.c.bf16 %v1143_v51, %v1143_v51 }
 0x471   :  { %1673 = vmatmul.msk.bf16.vlgmr.msrb.gmra.mxu3 %vm1057_vm10, %v1151_v55 }
 0x4b0   :  { %v1208_v15 = vpop.f32.mrf.mxu0 }
 0x4b1   :  { %v1309_v38 = vpack.c.bf16 %v1208_v15, %v1208_v15 }
 0x4b3   :  { %v1324_v21 = vshrl.u32 %v1309_v38, 16 }
 0x4b8   :  { %v1210_v59 = vpop.f32.mrf.mxu0 }
 0x4bb   :  { %v1189_v27 = vpop.f32.mrf.mxu3 }
 0x4bc   :  { %v1308_v36 = vpack.c.bf16 %v1189_v27, %v1189_v27 }
 0x4be   :  { %v1319_v52 = vshrl.u32 %v1308_v36, 16 }
 0x4c0   :  { %v1170_v53 = vpop.f32.mrf.mxu2 }
 0x4c1   :  { %v1307_v60 = vpack.c.bf16 %v1170_v53, %v1170_v53 }
 0x4c2   :  { %v1227_v6 = vpop.f32.mrf.mxu1 }
 0x4c3   :  { %v1317_v61 = vpack.i.b16 %v1308_v36, %v1307_v60  ;;  %v1318_v62 = vshrl.u32 %v1307_v60, 16  ;;  %v1310_v0 = vpack.c.bf16 %v1227_v6, %v1227_v6  ;;  %v1191_v1 = vpop.f32.mrf.mxu3 }
 0x4c5   :  { %v1320_v30 = vpack.i.b16 %v1319_v52, %v1318_v62  ;;  %v1343_v56 = vperm.slane %v1317_v61, %v1896_v28  ;;  %v1323_v3 = vpack.i.b16 %v1310_v0, %v1309_v38  ;;  %v1325_v42 = vshrl.u32 %v1310_v0, 16 }
 0x4c7   :  { %v1351_v4 = vrot.slane %v1343_v56, 4  ;;  %v1369_v9 = vperm.slane %v1320_v30, %v1896_v28  ;;  %v1326_v10 = vpack.i.b16 %v1325_v42, %v1324_v21  ;;  %v1348_v29 = vperm.slane %v1323_v3, %v1896_v28 }
 0x4c8   :  { %v1172_v11 = vpop.f32.mrf.mxu2 }
 0x4c9   :  { %v1377_v12 = vrot.slane %v1369_v9, 4  ;;  %v1349_v13 = vrot.slane %v1348_v29, 4  ;;  %v1352_v46 = vsel %vm206_vm8, %v1348_v29, %v1351_v4  ;;  %v1374_v17 = vperm.slane %v1326_v10, %v1896_v28 }
 0x4ca   :  { %v1360_v14 = vperm.slane %v1352_v46, %v1902_v48  ;;  %v1229_v7 = vpop.f32.mrf.mxu1  ;;  %v1284_v20 = vpop.f32.mrf.mxu0 }
 0x4cb   :  { %v1350_v22 = vsel %vm206_vm8, %v1349_v13, %v1343_v56  ;;  %v1375_v63 = vrot.slane %v1374_v17, 4  ;;  %v1378_v5 = vsel %vm206_vm8, %v1374_v17, %v1377_v12  ;;  %v1313_v60 = vpack.c.bf16 %v1284_v20, %v1284_v20 }
 0x4cc   :  { %v1356_v19 = vperm.slane %v1350_v22, %v1902_v48  ;;  %v1363_v23 = vrot.slane %v1360_v14, 4  ;;  %v1386_v2 = vperm.slane %v1378_v5, %v1902_v48 }
 0x4cd   :  { %v1376_v24 = vsel %vm206_vm8, %v1375_v63, %v1369_v9  ;;  %v1336_v52 = vshrl.u32 %v1313_v60, 16 }
 0x4ce   :  { %v1361_v25 = vrot.slane %v1356_v19, 4  ;;  %v1364_v31 = vsel %vm206_vm8, 0, %v1363_v23  ;;  %v1382_v33 = vperm.slane %v1376_v24, %v1902_v48  ;;  %v1389_v40 = vrot.slane %v1386_v2, 4 }
 0x4cf   :  { %v1448_v41 = vrot.slane %v1364_v31, 4  ;;  %v1443_v47 = vsel %vm206_vm8, %v1363_v23, %v1356_v19 }
 0x4d0   :  { %v1362_v43 = vsel %vm206_vm8, 0, %v1361_v25  ;;  %v1387_v8 = vrot.slane %v1382_v33, 4  ;;  %v1390_v45 = vsel %vm206_vm8, 0, %v1389_v40  ;;  %v1462_v50 = vsel %vm206_vm8, %v1389_v40, %v1382_v33 }
 0x4d1   :  { %v1449_v57 = vsel %vm206_vm8, %v1448_v41, %v1362_v43  ;;  %v1467_v58 = vrot.slane %v1390_v45, 4  ;;  %v1246_v16 = vpop.f32.mrf.mxu2  ;;  %v1447_v32 = vperm.slane %v1443_v47, %v1896_v28  ;;  %v1466_v26 = vperm.slane %v1462_v50, %v1896_v28 }
 0x4d2   :  { %v1388_v34 = vsel %vm206_vm8, 0, %v1387_v8  ;;  %v1453_v37 = vperm.slane %v1449_v57, %v1896_v28  ;;  %v1286_v44 = vpop.f32.mrf.mxu0  ;;  %v1303_v49 = vpop.f32.mrf.mxu1  ;;  %v1311_v62 = vpack.c.bf16 %v1246_v16, %v1246_v16 }
 0x4d3   :  { %v1468_v35 = vsel %vm206_vm8, %v1467_v58, %v1388_v34  ;;  %v1314_v53 = vpack.c.bf16 %v1303_v49, %v1303_v49 }
 0x4d4   :  { %v1454_v39 = vrot.slane %v1453_v37, 4  ;;  %v1472_v18 = vperm.slane %v1468_v35, %v1896_v28  ;;  %v1330_v56 = vshrl.u32 %v1311_v62, 16 }
 0x4d5   :  { %v1337_v6 = vshrl.u32 %v1314_v53, 16  ;;  %v1335_v61 = vpack.i.b16 %v1314_v53, %v1313_v60 }
 0x4d6   :  { %v1455_v54 = vsel %vm206_vm8, %v1454_v39, %v1447_v32  ;;  %v1473_v51 = vrot.slane %v1472_v18, 4 }
 0x4d7   :  { %v2300_v59 = vperm.slane %v1455_v54, %v1902_v48  ;;  %v1338_v0 = vpack.i.b16 %v1337_v6, %v1336_v52  ;;  %v1400_v21 = vperm.slane %v1335_v61, %v1896_v28 }
 0x4d8   :  { %v1474_v55 = vsel %vm206_vm8, %v1473_v51, %v1466_v26 }
 0x4d9   :  { %v1248_v15 = vpop.f32.mrf.mxu2  ;;  %v2303_v27 = vperm.slane %v1474_v55, %v1902_v48  ;;  %v1426_v3 = vperm.slane %v1338_v0, %v1896_v28  ;;  %v1401_v9 = vrot.slane %v1400_v21, 4  ;;  %v1460_v35 = vrot.slane %v2300_v59, 4 }
 0x4da   :  { %v1305_v36 = vpop.f32.mrf.mxu1  ;;  %v1522_v15 = vshrl.u32 %v2300_v59, 16 }
 0x4db   :  { %v1521_v38 = vpack.i.b16 %v2303_v27, %v2300_v59  ;;  %v1427_v11 = vrot.slane %v1426_v3, 4  ;;  %v1479_v37 = vrot.slane %v2303_v27, 4  ;;  %v1523_v26 = vshrl.u32 %v2303_v27, 16  ;;  %v1700_v27 = vld [vmem:[%s2372_s4 + $0x18] sm:$0xff] }
 0x4dc   :  { %v1461_v53 = vsel %vm206_vm8, 0, %v1460_v35  ;;  %1612 = vmatpush.bf16.msra.mxu2 %v1700_v27 }
 0x4dd   :  { %v1480_v51 = vsel %vm206_vm8, 0, %v1479_v37  ;;  %v1524_v6 = vpack.i.b16 %v1523_v26, %v1522_v15 }
 0x4de   :  { %v1529_v52 = vshrl.u32 %v1480_v51, 16 }
 0x4f4   :  { %v1265_v1 = vpop.f32.mrf.mxu3 }
 0x4f5   :  { %v1312_v30 = vpack.c.bf16 %v1265_v1, %v1265_v1 }
 0x4f7   :  { %v1329_v42 = vpack.i.b16 %v1312_v30, %v1311_v62  ;;  %v1331_v4 = vshrl.u32 %v1312_v30, 16  ;;  %v1528_v30 = vshrl.u32 %v1461_v53, 16 }
 0x4f9   :  { %v1332_v10 = vpack.i.b16 %v1331_v4, %v1330_v56  ;;  %v1395_v29 = vperm.slane %v1329_v42, %v1896_v28 }
 0x4fb   :  { %v1402_v12 = vsel %vm206_vm8, %v1401_v9, %v1395_v29  ;;  %v1403_v13 = vrot.slane %v1395_v29, 4  ;;  %v1421_v46 = vperm.slane %v1332_v10, %v1896_v28  ;;  %v1530_v9 = vpack.i.b16 %v1529_v52, %v1528_v30 }
 0x4fc   :  { %v1408_v17 = vperm.slane %v1402_v12, %v1902_v48  ;;  %v1267_v14 = vpop.f32.mrf.mxu3 }
 0x4fd   :  { %v1404_v7 = vsel %vm206_vm8, %v1400_v21, %v1403_v13  ;;  %v1428_v20 = vsel %vm206_vm8, %v1427_v11, %v1421_v46  ;;  %v1429_v22 = vrot.slane %v1421_v46, 4  ;;  %v1527_v21 = vpack.i.b16 %v1480_v51, %v1461_v53 }
 0x4fe   :  { %v1412_v63 = vperm.slane %v1404_v7, %v1902_v48  ;;  %v1434_v5 = vperm.slane %v1428_v20, %v1902_v48  ;;  %v1413_v23 = vrot.slane %v1408_v17, 4  ;;  %v1546_v11 = vunpack.c.l.b16 %v1524_v6 }
 0x4ff   :  { %v1430_v19 = vsel %vm206_vm8, %v1426_v3, %v1429_v22  ;;  %v1551_v46 = vunpack.c.l.b16 %v1527_v21  ;;  %v1556_v22 = vunpack.c.l.b16 %v1530_v9 }
 0x500   :  { %v1415_v2 = vrot.slane %v1412_v63, 4  ;;  %v1438_v24 = vperm.slane %v1430_v19, %v1902_v48  ;;  %v1439_v31 = vrot.slane %v1434_v5, 4  ;;  %v1414_v41 = vsel %vm206_vm8, 0, %v1413_v23  ;;  %v1697_v19 = vld [vmem:[%s2372_s4] sm:$0xff] }
 0x502   :  { %v1416_v25 = vsel %vm206_vm8, 0, %v1415_v2  ;;  %v1441_v33 = vrot.slane %v1438_v24, 4  ;;  %v1481_v8 = vsel %vm206_vm8, %v1415_v2, %v1408_v17  ;;  %v1440_v57 = vsel %vm206_vm8, 0, %v1439_v31 }
 0x503   :  { %v1486_v40 = vrot.slane %v1416_v25, 4  ;;  %v1485_v44 = vperm.slane %v1481_v8, %v1896_v28 }
 0x504   :  { %v1442_v43 = vsel %vm206_vm8, 0, %v1441_v33  ;;  %v1500_v16 = vsel %vm206_vm8, %v1441_v33, %v1434_v5  ;;  %v1698_v5 = vld [vmem:[%s2372_s4 + $0x8] sm:$0xff] }
 0x505   :  { %v1487_v45 = vsel %vm206_vm8, %v1486_v40, %v1414_v41  ;;  %v1505_v47 = vrot.slane %v1442_v43, 4  ;;  %v1504_v32 = vperm.slane %v1500_v16, %v1896_v28  ;;  %v1716_v40 = vld [vmem:[%s2373_s5] ss:$0 sm:$0xff] }
 0x506   :  { %v1491_v58 = vperm.slane %v1487_v45, %v1896_v28 }
 0x507   :  { %v1506_v34 = vsel %vm206_vm8, %v1505_v47, %v1440_v57 }
 0x508   :  { %v1492_v49 = vrot.slane %v1491_v58, 4  ;;  %v1510_v50 = vperm.slane %v1506_v34, %v1896_v28 }
 0x50a   :  { %v1493_v39 = vsel %vm206_vm8, %v1492_v49, %v1485_v44  ;;  %v1511_v18 = vrot.slane %v1510_v50, 4 }
 0x50b   :  { %v1497_v54 = vperm.slane %v1493_v39, %v1902_v48 }
 0x50c   :  { %v1512_v55 = vsel %vm206_vm8, %v1511_v18, %v1504_v32 }
 0x50d   :  { %v1516_v36 = vperm.slane %v1512_v55, %v1902_v48  ;;  %v1498_v60 = vrot.slane %v1497_v54, 4  ;;  %v1534_v28 = vshrl.u32 %v1497_v54, 16  ;;  %v1543_v48 = vunpack.c.l.b16 %v1521_v38  ;;  %v1699_v38 = vld [vmem:[%s2372_s4 + $0x10] sm:$0xff]  ;;  %s1791_s4 = smov [#allocation2]  }
 0x50e   :  { %1613 = vmatpush.bf16.msra.mxu2 %v1699_v38  ;;  %s1628_s9 = sshll.u32 %s1791_s4, 4  ;;  %s1629_s9 = int_to_ptr.vmem [resolvable:$true] %s1628_s9 }
 0x50f   :  { %v1535_v61 = vshrl.u32 %v1516_v36, 16  ;;  %v1499_v62 = vsel %vm206_vm8, 0, %v1498_v60  ;;  %v1517_v0 = vrot.slane %v1516_v36, 4  ;;  %v1533_v1 = vpack.i.b16 %v1516_v36, %v1497_v54 }
 0x510   :  { %v1540_v10 = vshrl.u32 %v1499_v62, 16 }
 0x511   :  { %v1536_v56 = vpack.i.b16 %v1535_v61, %v1534_v28  ;;  %v1518_v3 = vsel %vm206_vm8, 0, %v1517_v0  ;;  %v1544_v42 = vunpack.c.l.b16 %v1533_v1 }
 0x512   :  { %v1539_v4 = vpack.i.b16 %v1518_v3, %v1499_v62  ;;  %v1541_v29 = vshrl.u32 %v1518_v3, 16  ;;  %1614 = vmatpush.bf16.msra.mxu2 %v1698_v5 }
 0x513   :  { %v1547_v12 = vunpack.c.l.b16 %v1536_v56  ;;  %v1545_v13 = vpack.c.b16 %v1544_v42, %v1543_v48 }
 0x514   :  { %v1552_v17 = vunpack.c.l.b16 %v1539_v4  ;;  %v1542_v14 = vpack.i.b16 %v1541_v29, %v1540_v10 }
 0x515   :  { %v1548_v7 = vpack.c.b16 %v1547_v12, %v1546_v11 }
 0x516   :  { %v1553_v20 = vpack.c.b16 %v1552_v17, %v1551_v46  ;;  %v1557_v63 = vunpack.c.l.b16 %v1542_v14  ;;  %1615 = vmatpush.bf16.msra.mxu2 %v1697_v19 }
 0x517   :  { %1549 = vrot.lane.b32.xlu0 %v1548_v7, %s1788_s21 }
 0x518   :  { %1554 = vrot.lane.b32.xlu1 %v1553_v20, %s1789_s22  ;;  %v1558_v59 = vpack.c.b16 %v1557_v63, %v1556_v22 }
 0x51a   :  { %1559 = vrot.lane.b32.xlu2 %v1558_v59, %s1790_s23 }
 0x574   :  { %v1560_v25 = vpop.permute.xlu2 %1559 }
 0x589   :  { %v1550_v23 = vpop.permute.xlu0 %1549 }
 0x58a   :  { %v1563_v2 = vsel %vm904_vm9, %v1545_v13, %v1550_v23  ;;  %v1555_v24 = vpop.permute.xlu1 %1554 }
 0x58b   :  { %v1565_v31 = vsel %vm27_vm0, %v1563_v2, %v1555_v24 }
 0x58c   :  { %v1568_v33 = vsel %vm1566_vm12, %v1565_v31, %v1560_v25 }
 0x58d   :  { %1692 = vmatmul.msk.bf16.vlgmr.msra.gmra.mxu2 %vm1605_vm13, %v1568_v33 }
 0x610   :  { %v1617_v41 = vpop.f32.mrf.mxu2 }
 0x611   :  { %v1618_v43 = vadd.f32 %v1716_v40, %v1617_v41 }
 0x613   :  { %1622 = vst.msk [vmem:[#allocation2] sm:$0xff] %vm27_vm0, %v1618_v43 }
 0x618   :  { %v1619_v8 = vpop.f32.mrf.mxu2 }
 0x619   :  { %v1620_v45 = vadd.f32 %v1716_v40, %v1619_v8 }
 0x61b   :  { %1623 = vst.msk [vmem:[#allocation2 + $0x8] sm:$0xff] %vm27_vm0, %v1620_v45 }
 0x61c   :  { %1636 = dma.vmem_to_hbm [thread:$0]  %s1629_s9, 256, %s1631_s12, [#allocation3], %s1792_s13, %s1792_s13, %s1793_s14  }
 0x61d   :  { %1779 = dma.done.wait [#allocation3], 256  }
 0x61e   :  { %1780 = vsyncadd [#allocation3], 4294967040 }
 0x61f   :  { %1641 = vsyncpa [#allocation3], 1 }

</bundles_post_ra>
